<compile_context>
chip_gen: v7x
topology: tpu7x:2x2x1
jax: 0.10.0
libtpu: 0.0.40
codegen_flags: <defaults>
</compile_context>

<pallas_src>
import functools

import jax
import jax.numpy as jnp
from jax.experimental import pallas as pl
from jax.experimental.pallas import tpu as pltpu


_K = 4  # kernel size of every ConvTranspose2d in this Generator

_LAYER_CFG = (
    dict(stride=1, padding=0, act="relu"),
    dict(stride=2, padding=1, act="relu"),
    dict(stride=2, padding=1, act="relu"),
    dict(stride=2, padding=1, act="relu"),
    dict(stride=2, padding=1, act="tanh"),
)


# ---------------------------------------------------------------------------
# Pallas kernel: lane-dense GEMM  X(M,Cin) @ W(Cin, K*K*Cout)
#   inputs bf16 (MXU-native on v6e/v7x, fewer DMA bytes), f32 accumulate/store.
# ---------------------------------------------------------------------------
def _gemm_kernel(x_ref, w_ref, o_ref):
    o_ref[...] = jnp.dot(x_ref[...], w_ref[...],
                         preferred_element_type=jnp.float32)


def pallas_gemm(x_bf16, w_bf16):
    M, Kd = x_bf16.shape
    _, Co = w_bf16.shape
    # Whole-M blocks when small; big (>=256) M tiles otherwise.  Only the last
    # layer (M = N*32*32) actually tiles, which also gives a real "parallel"
    # grid axis for v7x megacore.
    tm = M
    for cand in (1024, 512, 256):
        if M % cand == 0:
            tm = cand
            break
    grid = (M // tm,)
    return pl.pallas_call(
        _gemm_kernel,
        out_shape=jax.ShapeDtypeStruct((M, Co), jnp.float32),
        grid_spec=pltpu.PrefetchScalarGridSpec(
            num_scalar_prefetch=0,
            grid=grid,
            in_specs=[
                pl.BlockSpec((tm, Kd), lambda i: (i, 0)),
                pl.BlockSpec((Kd, Co), lambda i: (0, 0)),
            ],
            out_specs=pl.BlockSpec((tm, Co), lambda i: (i, 0)),
        ),
        compiler_params=pltpu.CompilerParams(
            dimension_semantics=("parallel",)),
    )(x_bf16, w_bf16)


# ---------------------------------------------------------------------------
# col2im: scatter-add the per-input-pixel contributions of a transposed conv
# into the output grid.  Implemented with parity (sub-pixel) decomposition:
# only pads / adds / interleaving reshapes — no XLA scatter ops.
# ---------------------------------------------------------------------------
def _scatter_axis(y, stride, K):
    # y: (..., H, K)  ->  (..., (H-1)*stride + K)  with out[h*stride + k] += y[h, k]
    H = y.shape[-2]
    Hp = (H - 1) * stride + K
    Q = -(-Hp // stride)                      # ceil(Hp / stride)
    parts = []
    for r in range(stride):                   # output parity class
        acc = jnp.zeros(y.shape[:-2] + (Q,), y.dtype)
        for k in range(r, K, stride):         # taps hitting this parity
            m = (k - r) // stride
            sl = y[..., :, k]
            pads = [(0, 0)] * (sl.ndim - 1) + [(m, Q - H - m)]
            acc = acc + jnp.pad(sl, pads)
        parts.append(acc)
    out = jnp.stack(parts, axis=-1).reshape(y.shape[:-2] + (Q * stride,))
    return out[..., :Hp]


def col2im(y, N, H, W, K, C, stride, padding):
    Ho = (H - 1) * stride - 2 * padding + K
    Wo = (W - 1) * stride - 2 * padding + K
    y = y.reshape(N, H, W, K, K, C)
    t = jnp.transpose(y, (0, 2, 4, 5, 1, 3))     # (N, W, kw, C, H, kh)
    t = _scatter_axis(t, stride, K)              # (N, W, kw, C, Hp)
    t = jnp.transpose(t, (0, 4, 3, 1, 2))        # (N, Hp, C, W, kw)
    t = _scatter_axis(t, stride, K)              # (N, Hp, C, Wp)
    out = jnp.transpose(t, (0, 1, 3, 2))         # (N, Hp, Wp, C)
    return out[:, padding:padding + Ho, padding:padding + Wo, :]


# ---------------------------------------------------------------------------
# One ConvTranspose2d (+ folded BN + activation) layer
# ---------------------------------------------------------------------------
def conv_transpose_layer(x_nhwc, w_mat, bias, cout, *, stride, padding, act):
    N, H, W, Cin = x_nhwc.shape
    cp = w_mat.shape[1] // (_K * _K)             # (possibly padded) out channels
    x_flat = x_nhwc.reshape(N * H * W, Cin).astype(jnp.bfloat16)
    y = pallas_gemm(x_flat, w_mat)               # (N*H*W, K*K*cp) f32
    o = col2im(y, N, H, W, _K, cp, stride, padding)
    o = o[..., :cout] + bias.reshape(1, 1, 1, cout)
    if act == "relu":
        o = jnp.maximum(o, 0.0)
    else:  # tanh
        o = jnp.tanh(o)
    return o


def generator_forward(x_nchw, w_mats, biases, *, couts):
    x = jnp.transpose(x_nchw, (0, 2, 3, 1))              # NCHW -> NHWC
    for cfg, w_mat, bias, cout in zip(_LAYER_CFG, w_mats, biases, couts):
        x = conv_transpose_layer(x, w_mat, bias, cout, **cfg)
    return jnp.transpose(x, (0, 3, 1, 2))                # NHWC -> NCHW


# ---------------------------------------------------------------------------
# Parameters: deterministic synthetic init (PyTorch layout), then a one-time
# prepare step that folds BN scale into the weights, builds the (Cin, K*K*Cout)
# GEMM matrices in bf16 and pads the last layer's Cout to a multiple of 8
# (so its GEMM output width is a multiple of 128 lanes).
# ---------------------------------------------------------------------------
def init_params(key, num_input, num_futures, color_channels):
    nf = num_futures
    dims = [(num_input, nf * 8), (nf * 8, nf * 4), (nf * 4, nf * 2),
            (nf * 2, nf), (nf, color_channels)]
    eps = 1e-5
    params = []
    for i, (cin, cout) in enumerate(dims):
        key, kw, kg, kb, km, kv = jax.random.split(key, 6)
        w = 0.05 * jax.random.normal(kw, (cin, cout, _K, _K), jnp.float32)
        if i < len(dims) - 1:
            gamma = 1.0 + 0.1 * jax.random.normal(kg, (cout,), jnp.float32)
            beta = 0.1 * jax.random.normal(kb, (cout,), jnp.float32)
            mean = 0.1 * jax.random.normal(km, (cout,), jnp.float32)
            var = 1.0 + 0.1 * jax.random.uniform(kv, (cout,), jnp.float32)
            scale = gamma / jnp.sqrt(var + eps)
            bias = beta - mean * scale
        else:
            scale = jnp.ones((cout,), jnp.float32)
            bias = jnp.zeros((cout,), jnp.float32)
        params.append((w, scale, bias))
    return params


def prepare_params(params):
    w_mats, biases, couts = [], [], []
    for w, scale, bias in params:
        cin, cout, K, _ = w.shape
        cp = -(-cout // 8) * 8                               # pad to mult of 8
        wm = jnp.transpose(w, (0, 2, 3, 1)) * scale.reshape(1, 1, 1, cout)
        if cp != cout:
            wm = jnp.pad(wm, ((0, 0), (0, 0), (0, 0), (0, cp - cout)))
        w_mats.append(wm.reshape(cin, K * K * cp).astype(jnp.bfloat16))
        biases.append(bias.astype(jnp.float32))
        couts.append(int(cout))
    return tuple(w_mats), tuple(biases), tuple(couts)


if __name__ == "__main__":
    N, num_input, num_futures, color_channels = 2, 16, 8, 3

    key = jax.random.PRNGKey(0)
    kx, kp = jax.random.split(key)
    x = jax.random.normal(kx, (N, num_input, 1, 1), jnp.float32)
    params = init_params(kp, num_input, num_futures, color_channels)
    w_mats, biases, couts = prepare_params(params)

    fwd = jax.jit(functools.partial(generator_forward, couts=couts))
    out = jax.block_until_ready(fwd(x, w_mats, biases))

    assert out.shape == (N, color_channels, 64, 64), out.shape
    assert jnp.all(jnp.isfinite(out))
    assert jnp.all(jnp.abs(out) <= 1.0 + 1e-6)   # tanh range
    print("KERNEL_OK")
</pallas_src>

<mosaic_0001>
module attributes {stable_mosaic.version = 11 : i64} {
  func.func @_gemm_kernel(%arg0: i32, %arg1: memref<2x16xbf16, #tpu.memory_space<vmem>>, %arg2: memref<16x1024xbf16, #tpu.memory_space<vmem>>, %arg3: memref<2x1024xf32, #tpu.memory_space<vmem>>) attributes {dimension_semantics = [#tpu.dimension_semantics<parallel>], iteration_bounds = array<i64: 1>, scalar_prefetch = 0 : i64, scratch_operands = 0 : i64, tpu.core_type = #tpu.core_type<tc>, window_params = [{transform_indices = @transform_0, window_bounds = array<i64: 2, 16>}, {pipeline_mode = #tpu.pipeline_mode<synchronous>, transform_indices = @transform_1, window_bounds = array<i64: 16, 1024>}, {transform_indices = @transform_2, window_bounds = array<i64: 2, 1024>}]} {
    %c0 = arith.constant 0 : index
    %c0_0 = arith.constant 0 : index
    %0 = vector.load %arg1[%c0, %c0_0] : memref<2x16xbf16, #tpu.memory_space<vmem>>, vector<2x16xbf16>
    %c0_1 = arith.constant 0 : index
    %c0_2 = arith.constant 0 : index
    %1 = vector.load %arg2[%c0_1, %c0_2] : memref<16x1024xbf16, #tpu.memory_space<vmem>>, vector<16x1024xbf16>
    %cst = arith.constant dense<0.000000e+00> : vector<2x1024xf32>
    %2 = tpu.matmul %0, %1, %cst {dimension_numbers = #tpu.dot_dimension_numbers<[1], [0], [0], [1], [0, 0, 1, 1], [], []>} : vector<2x16xbf16>, vector<16x1024xbf16>, vector<2x1024xf32> -> vector<2x1024xf32>
    %c0_3 = arith.constant 0 : index
    %c0_4 = arith.constant 0 : index
    %3 = vector.load %arg3[%c0_3, %c0_4] : memref<2x1024xf32, #tpu.memory_space<vmem>>, vector<2x1024xf32>
    tpu.vector_store %arg3[%c0_3, %c0_4], %2 {strides = array<i32>} : memref<2x1024xf32, #tpu.memory_space<vmem>>, vector<2x1024xf32>,
    return
  }
  func.func @transform_0(%arg0: i32) -> (i32, i32) {
    %c0_i32 = arith.constant 0 : i32
    %c0_i32_0 = arith.constant 0 : i32
    return %arg0, %c0_i32 : i32, i32
  }
  func.func @transform_1(%arg0: i32) -> (i32, i32) {
    %c0_i32 = arith.constant 0 : i32
    %c0_i32_0 = arith.constant 0 : i32
    %c0_i32_1 = arith.constant 0 : i32
    return %c0_i32, %c0_i32_0 : i32, i32
  }
  func.func @transform_2(%arg0: i32) -> (i32, i32) {
    %c0_i32 = arith.constant 0 : i32
    %c0_i32_0 = arith.constant 0 : i32
    return %arg0, %c0_i32 : i32, i32
  }
}

module attributes {stable_mosaic.version = 11 : i64} {
  func.func @_gemm_kernel(%arg0: i32, %arg1: memref<32x64xbf16, #tpu.memory_space<vmem>>, %arg2: memref<64x512xbf16, #tpu.memory_space<vmem>>, %arg3: memref<32x512xf32, #tpu.memory_space<vmem>>) attributes {dimension_semantics = [#tpu.dimension_semantics<parallel>], iteration_bounds = array<i64: 1>, scalar_prefetch = 0 : i64, scratch_operands = 0 : i64, tpu.core_type = #tpu.core_type<tc>, window_params = [{transform_indices = @transform_0, window_bounds = array<i64: 32, 64>}, {pipeline_mode = #tpu.pipeline_mode<synchronous>, transform_indices = @transform_1, window_bounds = array<i64: 64, 512>}, {transform_indices = @transform_2, window_bounds = array<i64: 32, 512>}]} {
    %c0 = arith.constant 0 : index
    %c0_0 = arith.constant 0 : index
    %0 = vector.load %arg1[%c0, %c0_0] : memref<32x64xbf16, #tpu.memory_space<vmem>>, vector<32x64xbf16>
    %c0_1 = arith.constant 0 : index
    %c0_2 = arith.constant 0 : index
    %1 = vector.load %arg2[%c0_1, %c0_2] : memref<64x512xbf16, #tpu.memory_space<vmem>>, vector<64x512xbf16>
    %cst = arith.constant dense<0.000000e+00> : vector<32x512xf32>
    %2 = tpu.matmul %0, %1, %cst {dimension_numbers = #tpu.dot_dimension_numbers<[1], [0], [0], [1], [0, 0, 1, 1], [], []>} : vector<32x64xbf16>, vector<64x512xbf16>, vector<32x512xf32> -> vector<32x512xf32>
    %c0_3 = arith.constant 0 : index
    %c0_4 = arith.constant 0 : index
    %3 = vector.load %arg3[%c0_3, %c0_4] : memref<32x512xf32, #tpu.memory_space<vmem>>, vector<32x512xf32>
    tpu.vector_store %arg3[%c0_3, %c0_4], %2 {strides = array<i32>} : memref<32x512xf32, #tpu.memory_space<vmem>>, vector<32x512xf32>,
    return
  }
  func.func @transform_0(%arg0: i32) -> (i32, i32) {
    %c0_i32 = arith.constant 0 : i32
    %c0_i32_0 = arith.constant 0 : i32
    return %arg0, %c0_i32 : i32, i32
  }
  func.func @transform_1(%arg0: i32) -> (i32, i32) {
    %c0_i32 = arith.constant 0 : i32
    %c0_i32_0 = arith.constant 0 : i32
    %c0_i32_1 = arith.constant 0 : i32
    return %c0_i32, %c0_i32_0 : i32, i32
  }
  func.func @transform_2(%arg0: i32) -> (i32, i32) {
    %c0_i32 = arith.constant 0 : i32
    %c0_i32_0 = arith.constant 0 : i32
    return %arg0, %c0_i32 : i32, i32
  }
}

module attributes {stable_mosaic.version = 11 : i64} {
  func.func @_gemm_kernel(%arg0: i32, %arg1: memref<128x32xbf16, #tpu.memory_space<vmem>>, %arg2: memref<32x256xbf16, #tpu.memory_space<vmem>>, %arg3: memref<128x256xf32, #tpu.memory_space<vmem>>) attributes {dimension_semantics = [#tpu.dimension_semantics<parallel>], iteration_bounds = array<i64: 1>, scalar_prefetch = 0 : i64, scratch_operands = 0 : i64, tpu.core_type = #tpu.core_type<tc>, window_params = [{transform_indices = @transform_0, window_bounds = array<i64: 128, 32>}, {pipeline_mode = #tpu.pipeline_mode<synchronous>, transform_indices = @transform_1, window_bounds = array<i64: 32, 256>}, {transform_indices = @transform_2, window_bounds = array<i64: 128, 256>}]} {
    %c0 = arith.constant 0 : index
    %c0_0 = arith.constant 0 : index
    %0 = vector.load %arg1[%c0, %c0_0] : memref<128x32xbf16, #tpu.memory_space<vmem>>, vector<128x32xbf16>
    %c0_1 = arith.constant 0 : index
    %c0_2 = arith.constant 0 : index
    %1 = vector.load %arg2[%c0_1, %c0_2] : memref<32x256xbf16, #tpu.memory_space<vmem>>, vector<32x256xbf16>
    %cst = arith.constant dense<0.000000e+00> : vector<128x256xf32>
    %2 = tpu.matmul %0, %1, %cst {dimension_numbers = #tpu.dot_dimension_numbers<[1], [0], [0], [1], [0, 0, 1, 1], [], []>} : vector<128x32xbf16>, vector<32x256xbf16>, vector<128x256xf32> -> vector<128x256xf32>
    %c0_3 = arith.constant 0 : index
    %c0_4 = arith.constant 0 : index
    %3 = vector.load %arg3[%c0_3, %c0_4] : memref<128x256xf32, #tpu.memory_space<vmem>>, vector<128x256xf32>
    tpu.vector_store %arg3[%c0_3, %c0_4], %2 {strides = array<i32>} : memref<128x256xf32, #tpu.memory_space<vmem>>, vector<128x256xf32>,
    return
  }
  func.func @transform_0(%arg0: i32) -> (i32, i32) {
    %c0_i32 = arith.constant 0 : i32
    %c0_i32_0 = arith.constant 0 : i32
    return %arg0, %c0_i32 : i32, i32
  }
  func.func @transform_1(%arg0: i32) -> (i32, i32) {
    %c0_i32 = arith.constant 0 : i32
    %c0_i32_0 = arith.constant 0 : i32
    %c0_i32_1 = arith.constant 0 : i32
    return %c0_i32, %c0_i32_0 : i32, i32
  }
  func.func @transform_2(%arg0: i32) -> (i32, i32) {
    %c0_i32 = arith.constant 0 : i32
    %c0_i32_0 = arith.constant 0 : i32
    return %arg0, %c0_i32 : i32, i32
  }
}

module attributes {stable_mosaic.version = 11 : i64} {
  func.func @_gemm_kernel(%arg0: i32, %arg1: memref<512x16xbf16, #tpu.memory_space<vmem>>, %arg2: memref<16x128xbf16, #tpu.memory_space<vmem>>, %arg3: memref<512x128xf32, #tpu.memory_space<vmem>>) attributes {dimension_semantics = [#tpu.dimension_semantics<parallel>], iteration_bounds = array<i64: 1>, scalar_prefetch = 0 : i64, scratch_operands = 0 : i64, tpu.core_type = #tpu.core_type<tc>, window_params = [{transform_indices = @transform_0, window_bounds = array<i64: 512, 16>}, {pipeline_mode = #tpu.pipeline_mode<synchronous>, transform_indices = @transform_1, window_bounds = array<i64: 16, 128>}, {transform_indices = @transform_2, window_bounds = array<i64: 512, 128>}]} {
    %c0 = arith.constant 0 : index
    %c0_0 = arith.constant 0 : index
    %0 = vector.load %arg1[%c0, %c0_0] : memref<512x16xbf16, #tpu.memory_space<vmem>>, vector<512x16xbf16>
    %c0_1 = arith.constant 0 : index
    %c0_2 = arith.constant 0 : index
    %1 = vector.load %arg2[%c0_1, %c0_2] : memref<16x128xbf16, #tpu.memory_space<vmem>>, vector<16x128xbf16>
    %cst = arith.constant dense<0.000000e+00> : vector<512x128xf32>
    %2 = tpu.matmul %0, %1, %cst {dimension_numbers = #tpu.dot_dimension_numbers<[1], [0], [0], [1], [0, 0, 1, 1], [], []>} : vector<512x16xbf16>, vector<16x128xbf16>, vector<512x128xf32> -> vector<512x128xf32>
    %c0_3 = arith.constant 0 : index
    %c0_4 = arith.constant 0 : index
    %3 = vector.load %arg3[%c0_3, %c0_4] : memref<512x128xf32, #tpu.memory_space<vmem>>, vector<512x128xf32>
    tpu.vector_store %arg3[%c0_3, %c0_4], %2 {strides = array<i32>} : memref<512x128xf32, #tpu.memory_space<vmem>>, vector<512x128xf32>,
    return
  }
  func.func @transform_0(%arg0: i32) -> (i32, i32) {
    %c0_i32 = arith.constant 0 : i32
    %c0_i32_0 = arith.constant 0 : i32
    return %arg0, %c0_i32 : i32, i32
  }
  func.func @transform_1(%arg0: i32) -> (i32, i32) {
    %c0_i32 = arith.constant 0 : i32
    %c0_i32_0 = arith.constant 0 : i32
    %c0_i32_1 = arith.constant 0 : i32
    return %c0_i32, %c0_i32_0 : i32, i32
  }
  func.func @transform_2(%arg0: i32) -> (i32, i32) {
    %c0_i32 = arith.constant 0 : i32
    %c0_i32_0 = arith.constant 0 : i32
    return %arg0, %c0_i32 : i32, i32
  }
}

module attributes {stable_mosaic.version = 11 : i64} {
  func.func @_gemm_kernel(%arg0: i32, %arg1: memref<1024x8xbf16, #tpu.memory_space<vmem>>, %arg2: memref<8x128xbf16, #tpu.memory_space<vmem>>, %arg3: memref<1024x128xf32, #tpu.memory_space<vmem>>) attributes {dimension_semantics = [#tpu.dimension_semantics<parallel>], iteration_bounds = array<i64: 2>, scalar_prefetch = 0 : i64, scratch_operands = 0 : i64, tpu.core_type = #tpu.core_type<tc>, window_params = [{transform_indices = @transform_0, window_bounds = array<i64: 1024, 8>}, {pipeline_mode = #tpu.pipeline_mode<synchronous>, transform_indices = @transform_1, window_bounds = array<i64: 8, 128>}, {transform_indices = @transform_2, window_bounds = array<i64: 1024, 128>}]} {
    %c0 = arith.constant 0 : index
    %c0_0 = arith.constant 0 : index
    %0 = vector.load %arg1[%c0, %c0_0] : memref<1024x8xbf16, #tpu.memory_space<vmem>>, vector<1024x8xbf16>
    %c0_1 = arith.constant 0 : index
    %c0_2 = arith.constant 0 : index
    %1 = vector.load %arg2[%c0_1, %c0_2] : memref<8x128xbf16, #tpu.memory_space<vmem>>, vector<8x128xbf16>
    %cst = arith.constant dense<0.000000e+00> : vector<1024x128xf32>
    %2 = tpu.matmul %0, %1, %cst {dimension_numbers = #tpu.dot_dimension_numbers<[1], [0], [0], [1], [0, 0, 1, 1], [], []>} : vector<1024x8xbf16>, vector<8x128xbf16>, vector<1024x128xf32> -> vector<1024x128xf32>
    %c0_3 = arith.constant 0 : index
    %c0_4 = arith.constant 0 : index
    %3 = vector.load %arg3[%c0_3, %c0_4] : memref<1024x128xf32, #tpu.memory_space<vmem>>, vector<1024x128xf32>
    tpu.vector_store %arg3[%c0_3, %c0_4], %2 {strides = array<i32>} : memref<1024x128xf32, #tpu.memory_space<vmem>>, vector<1024x128xf32>,
    return
  }
  func.func @transform_0(%arg0: i32) -> (i32, i32) {
    %c0_i32 = arith.constant 0 : i32
    %c0_i32_0 = arith.constant 0 : i32
    return %arg0, %c0_i32 : i32, i32
  }
  func.func @transform_1(%arg0: i32) -> (i32, i32) {
    %c0_i32 = arith.constant 0 : i32
    %c0_i32_0 = arith.constant 0 : i32
    %c0_i32_1 = arith.constant 0 : i32
    return %c0_i32, %c0_i32_0 : i32, i32
  }
  func.func @transform_2(%arg0: i32) -> (i32, i32) {
    %c0_i32 = arith.constant 0 : i32
    %c0_i32_0 = arith.constant 0 : i32
    return %arg0, %c0_i32 : i32, i32
  }
}

</mosaic_0001>

<bundles_post_ra>
// kernel: generator_forward.5
= control target key start
LH: loop header
LB: loop body
LE: loop exit
PB: predicated region body
PF: predicated region fallthrough
CT: control target
= control target key end

     0   :  { %7 = vsyncpa [#allocation3], 0  ;;  %s335_s9 = smov [#allocation2]   ;;  %s376_s0 = inlined_call_operand.vmem [shape: bf16[2,16], index: 0, kind: input, shape index: {}]   ;;  %s377_s1 = inlined_call_operand.hbm [shape: bf16[16,1024], index: 1, kind: input, shape index: {}]   ;;  %s378_s2 = inlined_call_operand.vmem [shape: f32[2,1024], index: 2, kind: output, shape index: {}]  }
   0x1   :  { %s15_s10 = sshll.u32 %s335_s9, 4  ;;  %s311_s13 = scalar_lea.hbm %s377_s1, 1024  ;;  %s16_s10 = int_to_ptr.vmem [resolvable:$true] %s15_s10 }
   0x2   :  { %p312_p0 = scmp.ne.s32.totalorder %s377_s1, %s311_s13  ;;  %p315_p1 = scmp.lt.u32.totalorder %s311_s13, %s377_s1 }
   0x4   :  { %p317_p2 = pnand %p315_p1, %p312_p0 }
   0x6   :  { %320 = shalt.err (!%p317_p2)
}
   0x7   :  { %s321_s18 = scalar_lea.vmem %s16_s10, 1024  ;;  %p326_p4 = scmp.lt.s32.totalorder %s16_s10, %s16_s10 }
   0x8   :  { %p322_p3 = scmp.ne.s32.totalorder %s16_s10, %s321_s18  ;;  %p327_p5 = scmp.lt.s32.totalorder %s321_s18, %s321_s18 }
   0xa   :  { %p328_p6 = por %p327_p5, %p326_p4 }
   0xc   :  { %p329_p7 = pnand %p328_p6, %p322_p3 }
   0xe   :  { %332 = shalt.err (!%p329_p7)
}
   0xf   :  { %s336_s19 = smov 512   ;;  %s337_s20 = smov 32  }
  0x10   :  { %21 = dma.hbm_to_vmem [thread:$0]  %s377_s1, 1024, %s16_s10, [#allocation3], %s336_s19, %s336_s19, %s337_s20  }
  0x11   :  { %333 = dma.done.wait [#allocation3], 1024  }
  0x12   :  { %334 = vsyncadd [#allocation3], 4294966272  ;;  %v338_v0 = vmov 0   ;;  %v27_v1 = vld [vmem:[#allocation2] sm:$0xff]  ;;  %v28_v3 = vld [vmem:[#allocation2 + $0x8] sm:$0xff]  ;;  %vm75_vm0 = vcmask 130048   ;;  %v256_v20 = vlaneseq }
  0x13   :  { %111 = vmatprep.mubr.bf16.mxu0 %v338_v0  ;;  %152 = vmatprep.mubr.bf16.mxu1 %v338_v0  ;;  %v31_v2 = vld [vmem:[#allocation2 + $0x20] sm:$0xff]  ;;  %v32_v5 = vld [vmem:[#allocation2 + $0x28] sm:$0xff]  ;;  %v29_v7 = vld [vmem:[#allocation2 + $0x10] sm:$0xff]  ;;  %v339_v18 = vmov 1983009808  }
  0x14   :  { %v295_v4 = vcombine.high %v27_v1, %v31_v2  ;;  %v294_v6 = vcombine.low %v27_v1, %v31_v2  ;;  %v297_v8 = vcombine.high %v28_v3, %v32_v5  ;;  %v296_v9 = vcombine.low %v28_v3, %v32_v5  ;;  %v33_v10 = vld [vmem:[#allocation2 + $0x30] sm:$0xff]  ;;  %v30_v11 = vld [vmem:[#allocation2 + $0x18] sm:$0xff]  ;;  %v26_v15 = vld [vmem:[%s376_s0] sm:$0x1] }
  0x15   :  { %v34_v12 = vld [vmem:[#allocation2 + $0x38] sm:$0xff]  ;;  %v299_v13 = vcombine.high %v29_v7, %v33_v10  ;;  %v298_v16 = vcombine.low %v29_v7, %v33_v10  ;;  %v254_v19 = vunpack.c.l.s4 %v339_v18  ;;  %v257_v22 = vshrl.u32 %v256_v20, 7 }
  0x16   :  { %79 = vmatprep.subr.bf16.mxu0 %v295_v4  ;;  %v301_v14 = vcombine.high %v30_v11, %v34_v12  ;;  %120 = vmatprep.subr.bf16.mxu1 %v297_v8  ;;  %v300_v17 = vcombine.low %v30_v11, %v34_v12 }
  0x17   :  { %80 = vmatpush1.bf16.msra.mxu0 %v294_v6  ;;  %121 = vmatpush1.bf16.msra.mxu1 %v296_v9  ;;  %v255_v21 = vunpack.c.0.s8 %v254_v19 }
  0x18   :  { %161 = vmatprep.subr.bf16.mxu0 %v299_v13  ;;  %202 = vmatprep.subr.bf16.mxu1 %v301_v14 }
  0x19   :  { %v258_v24 = vsub.s32 %v255_v21, %v257_v22 }
  0x1a   :  { %302 = vmatmul.mubr.msk.bf16.vlgmr.msra.gmra.mrb[0].mxu0 %vm75_vm0, %v26_v15  ;;  %303 = vmatmul.mubr.msk.bf16.vlgmr.msra.gmra.mrb[0].mxu1 %vm75_vm0, %v26_v15 }
  0x1b   :  { %162 = vmatpush1.bf16.msra.mxu0 %v298_v16  ;;  %203 = vmatpush1.bf16.msra.mxu1 %v300_v17 }
  0x1c   :  { %193 = vmatprep.mubr.bf16.mxu0 %v338_v0  ;;  %234 = vmatprep.mubr.bf16.mxu1 %v338_v0 }
  0x22   :  { %304 = vmatmul.mubr.msk.bf16.vlgmr.msra.gmra.mrb[4].mxu0 %vm75_vm0, %v26_v15  ;;  %305 = vmatmul.mubr.msk.bf16.vlgmr.msra.gmra.mrb[4].mxu1 %vm75_vm0, %v26_v15 }
  0xed   :  { %v113_v23 = vpop.f32.mrb[0].mxu0  ;;  %v154_v25 = vpop.f32.mrb[0].mxu1 }
  0xee   :  { %v115_v26 = vpop.f32.mrb[1].mxu0  ;;  %v156_v28 = vpop.f32.mrb[1].mxu1 }
  0xef   :  { %v251_v27 = vcombine.low %v113_v23, %v115_v26  ;;  %v117_v29 = vpop.f32.mrb[2].mxu0  ;;  %v252_v30 = vcombine.low %v154_v25, %v156_v28  ;;  %v158_v31 = vpop.f32.mrb[2].mxu1 }
  0xf0   :  { %v118_v32 = vpop.f32.mrb[3].mxu0  ;;  %v159_v34 = vpop.f32.mrb[3].mxu1 }
  0xf1   :  { %v259_v33 = vrot.slane %v251_v27, %v258_v24  ;;  %v266_v35 = vrot.slane %v252_v30, %v258_v24 }
  0xf3   :  { %v267_v36 = vcombine.low %v259_v33, %v266_v35 }
  0xf5   :  { %v195_v37 = vpop.f32.mrb[4].mxu0  ;;  %287 = vst [vmem:[%s378_s2] sm:$0xff] %v267_v36  ;;  %v236_v38 = vpop.f32.mrb[4].mxu1 }
  0xf6   :  { %v197_v39 = vpop.f32.mrb[5].mxu0  ;;  %v238_v41 = vpop.f32.mrb[5].mxu1 }
  0xf7   :  { %v268_v40 = vcombine.low %v195_v37, %v197_v39  ;;  %v199_v42 = vpop.f32.mrb[6].mxu0  ;;  %v269_v43 = vcombine.low %v236_v38, %v238_v41  ;;  %v240_v44 = vpop.f32.mrb[6].mxu1 }
  0xf8   :  { %v200_v45 = vpop.f32.mrb[7].mxu0  ;;  %v241_v47 = vpop.f32.mrb[7].mxu1 }
  0xf9   :  { %v276_v46 = vrot.slane %v268_v40, %v258_v24  ;;  %v283_v48 = vrot.slane %v269_v43, %v258_v24 }
  0xfb   :  { %v284_v49 = vcombine.low %v276_v46, %v283_v48 }
  0xfd   :  { %288 = vst [vmem:[%s378_s2 + $0x8] sm:$0xff] %v284_v49 }
  0xfe   :  { %293 = vsyncpa [#allocation3], 1 }

// kernel: generator_forward.6
= control target key start
LH: loop header
LB: loop body
LE: loop exit
PB: predicated region body
PF: predicated region fallthrough
CT: control target
= control target key end

     0   :  { %7 = vsyncpa [#allocation3], 0  ;;  %s346_s9 = smov [#allocation2]   ;;  %s431_s0 = inlined_call_operand.vmem [shape: bf16[32,64], index: 0, kind: input, shape index: {}]   ;;  %s432_s1 = inlined_call_operand.hbm [shape: bf16[64,512], index: 1, kind: input, shape index: {}]   ;;  %s433_s2 = inlined_call_operand.vmem [shape: f32[32,512], index: 2, kind: output, shape index: {}]  }
   0x1   :  { %s15_s10 = sshll.u32 %s346_s9, 4  ;;  %s322_s13 = scalar_lea.hbm %s432_s1, 2048  ;;  %s16_s10 = int_to_ptr.vmem [resolvable:$true] %s15_s10 }
   0x2   :  { %p323_p0 = scmp.ne.s32.totalorder %s432_s1, %s322_s13  ;;  %p326_p1 = scmp.lt.u32.totalorder %s322_s13, %s432_s1 }
   0x4   :  { %p328_p2 = pnand %p326_p1, %p323_p0 }
   0x6   :  { %331 = shalt.err (!%p328_p2)
}
   0x7   :  { %s332_s18 = scalar_lea.vmem %s16_s10, 2048  ;;  %p337_p4 = scmp.lt.s32.totalorder %s16_s10, %s16_s10 }
   0x8   :  { %p333_p3 = scmp.ne.s32.totalorder %s16_s10, %s332_s18  ;;  %p338_p5 = scmp.lt.s32.totalorder %s332_s18, %s332_s18 }
   0xa   :  { %p339_p6 = por %p338_p5, %p337_p4 }
   0xc   :  { %p340_p7 = pnand %p339_p6, %p333_p3 }
   0xe   :  { %343 = shalt.err (!%p340_p7)
}
   0xf   :  { %s347_s19 = smov 256   ;;  %s348_s20 = smov 16  }
  0x10   :  { %21 = dma.hbm_to_vmem [thread:$0]  %s432_s1, 2048, %s16_s10, [#allocation3], %s347_s19, %s347_s19, %s348_s20  }
  0x11   :  { %344 = dma.done.wait [#allocation3], 2048  }
  0x12   :  { %345 = vsyncadd [#allocation3], 4294965248  ;;  %v349_v0 = vmov 0   ;;  %v296_v1 = vld [vmem:[#allocation2 + $0x4] ss:$16 sps:$4 sm:$0xff]   ;;  %vm136_vm0 = vcmask 523264  }
  0x13   :  { %175 = vmatprep.mubr.bf16.mxu0 %v349_v0  ;;  %228 = vmatprep.mubr.bf16.mxu1 %v349_v0  ;;  %v298_v2 = vld [vmem:[#allocation2 + $0xc] ss:$16 sps:$4 sm:$0xff]   ;;  %v300_v3 = vld [vmem:[#allocation2] ss:$16 sps:$4 sm:$0xff]   ;;  %v301_v4 = vld [vmem:[#allocation2 + $0x8] ss:$16 sps:$4 sm:$0xff]  }
  0x14   :  { %143 = vmatprep.subr.bf16.mxu0 %v296_v1  ;;  %196 = vmatprep.subr.bf16.mxu1 %v298_v2  ;;  %v302_v5 = vld [vmem:[#allocation2 + $0x24] ss:$16 sps:$4 sm:$0xff]   ;;  %v304_v6 = vld [vmem:[#allocation2 + $0x2c] ss:$16 sps:$4 sm:$0xff]   ;;  %v306_v7 = vld [vmem:[#allocation2 + $0x20] ss:$16 sps:$4 sm:$0xff]  }
  0x15   :  { %144 = vmatpush1.bf16.msra.mxu0 %v300_v3  ;;  %197 = vmatpush1.bf16.msra.mxu1 %v301_v4  ;;  %v307_v8 = vld [vmem:[#allocation2 + $0x28] ss:$16 sps:$4 sm:$0xff]   ;;  %v308_v9 = vld [vmem:[#allocation2 + $0x44] ss:$16 sps:$4 sm:$0xff]   ;;  %v310_v10 = vld [vmem:[#allocation2 + $0x4c] ss:$16 sps:$4 sm:$0xff]  }
  0x16   :  { %145 = vmatprep.subr.bf16.mxu0 %v302_v5  ;;  %198 = vmatprep.subr.bf16.mxu1 %v304_v6  ;;  %v312_v11 = vld [vmem:[#allocation2 + $0x40] ss:$16 sps:$4 sm:$0xff]   ;;  %v313_v12 = vld [vmem:[#allocation2 + $0x48] ss:$16 sps:$4 sm:$0xff]   ;;  %v314_v13 = vld [vmem:[#allocation2 + $0x64] ss:$16 sps:$4 sm:$0xff]  }
  0x17   :  { %v316_v14 = vld [vmem:[#allocation2 + $0x6c] ss:$16 sps:$4 sm:$0xff]   ;;  %v318_v15 = vld [vmem:[#allocation2 + $0x60] ss:$16 sps:$4 sm:$0xff]   ;;  %v319_v16 = vld [vmem:[#allocation2 + $0x68] ss:$16 sps:$4 sm:$0xff]  }
  0x18   :  { %v320_v17 = vld [vmem:[%s431_s0] sm:$0xff]   ;;  %v321_v18 = vld [vmem:[%s431_s0 + $0x8] sm:$0xff]  }
  0x19   :  { %146 = vmatpush1.bf16.msra.mxu0 %v306_v7  ;;  %199 = vmatpush1.bf16.msra.mxu1 %v307_v8 }
  0x1a   :  { %147 = vmatprep.subr.bf16.mxu0 %v308_v9  ;;  %200 = vmatprep.subr.bf16.mxu1 %v310_v10 }
  0x1d   :  { %148 = vmatpush1.bf16.msra.mxu0 %v312_v11  ;;  %201 = vmatpush1.bf16.msra.mxu1 %v313_v12 }
  0x1e   :  { %149 = vmatprep.subr.bf16.mxu0 %v314_v13  ;;  %202 = vmatprep.subr.bf16.mxu1 %v316_v14 }
  0x21   :  { %150 = vmatpush1.bf16.msra.mxu0 %v318_v15  ;;  %203 = vmatpush1.bf16.msra.mxu1 %v319_v16 }
  0x24   :  { %288 = vmatmul.mubr.msk.bf16.vlgmr.msra.gmra.mrb[0].mxu0 %vm136_vm0, %v320_v17  ;;  %290 = vmatmul.mubr.msk.bf16.vlgmr.msra.gmra.mrb[0].mxu1 %vm136_vm0, %v320_v17 }
  0x25   :  { %185 = vmatprep.mubr.bf16.mxu0 %v349_v0  ;;  %238 = vmatprep.mubr.bf16.mxu1 %v349_v0 }
  0x2c   :  { %289 = vmatmul.mubr.msk.bf16.gmra.mrb[4].mxu0 %vm136_vm0, %v321_v18  ;;  %291 = vmatmul.mubr.msk.bf16.gmra.mrb[4].mxu1 %vm136_vm0, %v321_v18 }
  0xf7   :  { %v177_v19 = vpop.f32.mrb[0].mxu0  ;;  %v230_v20 = vpop.f32.mrb[0].mxu1 }
  0xf8   :  { %249 = vst [vmem:[%s433_s2] sm:$0xff] %v177_v19  ;;  %251 = vst [vmem:[%s433_s2 + $0x10] sm:$0xff] %v230_v20  ;;  %v179_v21 = vpop.f32.mrb[1].mxu0  ;;  %v232_v22 = vpop.f32.mrb[1].mxu1 }
  0xf9   :  { %250 = vst [vmem:[%s433_s2 + $0x8] sm:$0xff] %v179_v21  ;;  %252 = vst [vmem:[%s433_s2 + $0x18] sm:$0xff] %v232_v22  ;;  %v181_v23 = vpop.f32.mrb[2].mxu0  ;;  %v234_v24 = vpop.f32.mrb[2].mxu1 }
  0xfa   :  { %253 = vst [vmem:[%s433_s2 + $0x20] sm:$0xff] %v181_v23  ;;  %255 = vst [vmem:[%s433_s2 + $0x30] sm:$0xff] %v234_v24  ;;  %v183_v25 = vpop.f32.mrb[3].mxu0  ;;  %v236_v26 = vpop.f32.mrb[3].mxu1 }
  0xfb   :  { %254 = vst [vmem:[%s433_s2 + $0x28] sm:$0xff] %v183_v25  ;;  %256 = vst [vmem:[%s433_s2 + $0x38] sm:$0xff] %v236_v26 }
  0xff   :  { %v187_v27 = vpop.f32.mrb[4].mxu0  ;;  %v240_v28 = vpop.f32.mrb[4].mxu1 }
 0x100   :  { %257 = vst [vmem:[%s433_s2 + $0x40] sm:$0xff] %v187_v27  ;;  %259 = vst [vmem:[%s433_s2 + $0x50] sm:$0xff] %v240_v28  ;;  %v189_v29 = vpop.f32.mrb[5].mxu0  ;;  %v242_v30 = vpop.f32.mrb[5].mxu1 }
 0x101   :  { %258 = vst [vmem:[%s433_s2 + $0x48] sm:$0xff] %v189_v29  ;;  %260 = vst [vmem:[%s433_s2 + $0x58] sm:$0xff] %v242_v30  ;;  %v191_v31 = vpop.f32.mrb[6].mxu0  ;;  %v244_v32 = vpop.f32.mrb[6].mxu1 }
 0x102   :  { %261 = vst [vmem:[%s433_s2 + $0x60] sm:$0xff] %v191_v31  ;;  %263 = vst [vmem:[%s433_s2 + $0x70] sm:$0xff] %v244_v32  ;;  %v193_v33 = vpop.f32.mrb[7].mxu0  ;;  %v246_v34 = vpop.f32.mrb[7].mxu1 }
 0x103   :  { %262 = vst [vmem:[%s433_s2 + $0x68] sm:$0xff] %v193_v33  ;;  %264 = vst [vmem:[%s433_s2 + $0x78] sm:$0xff] %v246_v34 }
 0x104   :  { %269 = vsyncpa [#allocation3], 1 }

// kernel: generator_forward.7
= control target key start
LH: loop header
LB: loop body
LE: loop exit
PB: predicated region body
PF: predicated region fallthrough
CT: control target
= control target key end

     0   :  { %v305_v1 = vmov 0   ;;  %vm92_vm0 = vcmask 261120   ;;  %s461_s1 = inlined_call_operand.vmem [shape: bf16[32,256], index: 1, kind: input, shape index: {}]   ;;  %s462_s0 = inlined_call_operand.vmem [shape: bf16[128,32], index: 0, kind: input, shape index: {}]   ;;  %s463_s2 = inlined_call_operand.vmem [shape: f32[128,256], index: 2, kind: output, shape index: {}]  }
   0x1   :  { %v291_v0 = vld [vmem:[%s461_s1 + $0x4] ss:$8 sps:$4 sm:$0xff]   ;;  %149 = vmatprep.mubr.bf16.mxu0 %v305_v1  ;;  %189 = vmatprep.mubr.bf16.mxu1 %v305_v1  ;;  %v293_v2 = vld [vmem:[%s461_s1] ss:$8 sps:$4 sm:$0xff]   ;;  %v294_v3 = vld [vmem:[%s461_s1 + $0x14] ss:$8 sps:$4 sm:$0xff]  }
   0x2   :  { %117 = vmatprep.subr.bf16.mxu0 %v291_v0  ;;  %286 = vmatprep.subr.bf16.mxu1 %v291_v0  ;;  %v296_v4 = vld [vmem:[%s461_s1 + $0x10] ss:$8 sps:$4 sm:$0xff]   ;;  %v297_v5 = vld [vmem:[%s462_s0] sm:$0xff]   ;;  %v299_v7 = vld [vmem:[%s462_s0 + $0x8] sm:$0xff]  }
   0x3   :  { %118 = vmatpush1.bf16.msra.mxu0 %v293_v2  ;;  %288 = vmatpush1.bf16.msra.mxu1 %v293_v2  ;;  %v298_v6 = vld [vmem:[%s462_s0 + $0x20] sm:$0xff]   ;;  %v300_v8 = vld [vmem:[%s462_s0 + $0x28] sm:$0xff]   ;;  %v301_v9 = vld [vmem:[%s462_s0 + $0x10] sm:$0xff]  }
   0x4   :  { %119 = vmatprep.subr.bf16.mxu0 %v294_v3  ;;  %287 = vmatprep.subr.bf16.mxu1 %v294_v3  ;;  %v302_v10 = vld [vmem:[%s462_s0 + $0x30] sm:$0xff]   ;;  %v303_v11 = vld [vmem:[%s462_s0 + $0x18] sm:$0xff]  }
   0x5   :  { %v304_v12 = vld [vmem:[%s462_s0 + $0x38] sm:$0xff]  }
   0x7   :  { %120 = vmatpush1.bf16.msra.mxu0 %v296_v4  ;;  %289 = vmatpush1.bf16.msra.mxu1 %v296_v4 }
   0xa   :  { %278 = vmatmul.mubr.msk.bf16.vlgmr.msra.gmra.mrb[0].mxu0 %vm92_vm0, %v297_v5  ;;  %282 = vmatmul.mubr.msk.bf16.vlgmr.msra.gmra.mrb[0].mxu1 %vm92_vm0, %v298_v6 }
   0xb   :  { %159 = vmatprep.mubr.bf16.mxu0 %v305_v1  ;;  %199 = vmatprep.mubr.bf16.mxu1 %v305_v1 }
  0x12   :  { %279 = vmatmul.mubr.msk.bf16.gmra.mrb[4].mxu0 %vm92_vm0, %v299_v7  ;;  %283 = vmatmul.mubr.msk.bf16.gmra.mrb[4].mxu1 %vm92_vm0, %v300_v8 }
  0x13   :  { %169 = vmatprep.mubr.bf16.mxu0 %v305_v1  ;;  %209 = vmatprep.mubr.bf16.mxu1 %v305_v1 }
  0x1a   :  { %280 = vmatmul.mubr.msk.bf16.gmra.mrb[8].mxu0 %vm92_vm0, %v301_v9  ;;  %284 = vmatmul.mubr.msk.bf16.gmra.mrb[8].mxu1 %vm92_vm0, %v302_v10 }
  0x1b   :  { %179 = vmatprep.mubr.bf16.mxu0 %v305_v1  ;;  %219 = vmatprep.mubr.bf16.mxu1 %v305_v1 }
  0x22   :  { %281 = vmatmul.mubr.msk.bf16.gmra.mrb[12].mxu0 %vm92_vm0, %v303_v11  ;;  %285 = vmatmul.mubr.msk.bf16.gmra.mrb[12].mxu1 %vm92_vm0, %v304_v12 }
  0xdd   :  { %v151_v13 = vpop.f32.mrb[0].mxu0  ;;  %v191_v14 = vpop.f32.mrb[0].mxu1 }
  0xde   :  { %230 = vst [vmem:[%s463_s2] sm:$0xff] %v151_v13  ;;  %246 = vst [vmem:[%s463_s2 + $0x80] sm:$0xff] %v191_v14  ;;  %v153_v15 = vpop.f32.mrb[1].mxu0  ;;  %v193_v16 = vpop.f32.mrb[1].mxu1 }
  0xdf   :  { %231 = vst [vmem:[%s463_s2 + $0x8] sm:$0xff] %v153_v15  ;;  %247 = vst [vmem:[%s463_s2 + $0x88] sm:$0xff] %v193_v16  ;;  %v155_v17 = vpop.f32.mrb[2].mxu0  ;;  %v195_v18 = vpop.f32.mrb[2].mxu1 }
  0xe0   :  { %232 = vst [vmem:[%s463_s2 + $0x10] sm:$0xff] %v155_v17  ;;  %248 = vst [vmem:[%s463_s2 + $0x90] sm:$0xff] %v195_v18  ;;  %v157_v19 = vpop.f32.mrb[3].mxu0  ;;  %v197_v20 = vpop.f32.mrb[3].mxu1 }
  0xe1   :  { %233 = vst [vmem:[%s463_s2 + $0x18] sm:$0xff] %v157_v19  ;;  %249 = vst [vmem:[%s463_s2 + $0x98] sm:$0xff] %v197_v20 }
  0xe5   :  { %v161_v21 = vpop.f32.mrb[4].mxu0  ;;  %v201_v22 = vpop.f32.mrb[4].mxu1 }
  0xe6   :  { %234 = vst [vmem:[%s463_s2 + $0x20] sm:$0xff] %v161_v21  ;;  %250 = vst [vmem:[%s463_s2 + $0xa0] sm:$0xff] %v201_v22  ;;  %v163_v23 = vpop.f32.mrb[5].mxu0  ;;  %v203_v24 = vpop.f32.mrb[5].mxu1 }
  0xe7   :  { %235 = vst [vmem:[%s463_s2 + $0x28] sm:$0xff] %v163_v23  ;;  %251 = vst [vmem:[%s463_s2 + $0xa8] sm:$0xff] %v203_v24  ;;  %v165_v25 = vpop.f32.mrb[6].mxu0  ;;  %v205_v26 = vpop.f32.mrb[6].mxu1 }
  0xe8   :  { %236 = vst [vmem:[%s463_s2 + $0x30] sm:$0xff] %v165_v25  ;;  %252 = vst [vmem:[%s463_s2 + $0xb0] sm:$0xff] %v205_v26  ;;  %v167_v27 = vpop.f32.mrb[7].mxu0  ;;  %v207_v28 = vpop.f32.mrb[7].mxu1 }
  0xe9   :  { %237 = vst [vmem:[%s463_s2 + $0x38] sm:$0xff] %v167_v27  ;;  %253 = vst [vmem:[%s463_s2 + $0xb8] sm:$0xff] %v207_v28 }
  0xed   :  { %v171_v29 = vpop.f32.mrb[8].mxu0  ;;  %v211_v30 = vpop.f32.mrb[8].mxu1 }
  0xee   :  { %238 = vst [vmem:[%s463_s2 + $0x40] sm:$0xff] %v171_v29  ;;  %254 = vst [vmem:[%s463_s2 + $0xc0] sm:$0xff] %v211_v30  ;;  %v173_v31 = vpop.f32.mrb[9].mxu0  ;;  %v213_v32 = vpop.f32.mrb[9].mxu1 }
  0xef   :  { %239 = vst [vmem:[%s463_s2 + $0x48] sm:$0xff] %v173_v31  ;;  %255 = vst [vmem:[%s463_s2 + $0xc8] sm:$0xff] %v213_v32  ;;  %v175_v33 = vpop.f32.mrb[10].mxu0  ;;  %v215_v34 = vpop.f32.mrb[10].mxu1 }
  0xf0   :  { %240 = vst [vmem:[%s463_s2 + $0x50] sm:$0xff] %v175_v33  ;;  %256 = vst [vmem:[%s463_s2 + $0xd0] sm:$0xff] %v215_v34  ;;  %v177_v35 = vpop.f32.mrb[11].mxu0  ;;  %v217_v36 = vpop.f32.mrb[11].mxu1 }
  0xf1   :  { %241 = vst [vmem:[%s463_s2 + $0x58] sm:$0xff] %v177_v35  ;;  %257 = vst [vmem:[%s463_s2 + $0xd8] sm:$0xff] %v217_v36 }
  0xf5   :  { %v181_v37 = vpop.f32.mrb[12].mxu0  ;;  %v221_v38 = vpop.f32.mrb[12].mxu1 }
  0xf6   :  { %242 = vst [vmem:[%s463_s2 + $0x60] sm:$0xff] %v181_v37  ;;  %258 = vst [vmem:[%s463_s2 + $0xe0] sm:$0xff] %v221_v38  ;;  %v183_v39 = vpop.f32.mrb[13].mxu0  ;;  %v223_v40 = vpop.f32.mrb[13].mxu1 }
  0xf7   :  { %243 = vst [vmem:[%s463_s2 + $0x68] sm:$0xff] %v183_v39  ;;  %259 = vst [vmem:[%s463_s2 + $0xe8] sm:$0xff] %v223_v40  ;;  %v185_v41 = vpop.f32.mrb[14].mxu0  ;;  %v225_v42 = vpop.f32.mrb[14].mxu1 }
  0xf8   :  { %244 = vst [vmem:[%s463_s2 + $0x70] sm:$0xff] %v185_v41  ;;  %260 = vst [vmem:[%s463_s2 + $0xf0] sm:$0xff] %v225_v42  ;;  %v187_v43 = vpop.f32.mrb[15].mxu0  ;;  %v227_v44 = vpop.f32.mrb[15].mxu1 }
  0xf9   :  { %245 = vst [vmem:[%s463_s2 + $0x78] sm:$0xff] %v187_v43  ;;  %261 = vst [vmem:[%s463_s2 + $0xf8] sm:$0xff] %v227_v44 }

// kernel: generator_forward.8
= control target key start
LH: loop header
LB: loop body
LE: loop exit
PB: predicated region body
PF: predicated region fallthrough
CT: control target
= control target key end

     0   :  { %vm244_vm0 = vcmask 130048   ;;  %s1235_s1 = inlined_call_operand.vmem [shape: bf16[16,128], index: 1, kind: input, shape index: {}]   ;;  %s1236_s0 = inlined_call_operand.vmem [shape: bf16[512,16], index: 0, kind: input, shape index: {}]   ;;  %s1237_s2 = inlined_call_operand.vmem [shape: f32[512,128], index: 2, kind: output, shape index: {}]  }
   0x1   :  { %v864_v0 = vld [vmem:[%s1235_s1] sm:$0xff]   ;;  %v867_v3 = vld [vmem:[%s1236_s0 + $0x8] sm:$0xff]   ;;  %v869_v5 = vld [vmem:[%s1236_s0 + $0x10] sm:$0xff]  }
   0x2   :  { %v865_v1 = vld [vmem:[%s1236_s0] sm:$0xff]   ;;  %796 = vmatprep.subr.bf16.mxu0 %v864_v0  ;;  %862 = vmatprep.subr.bf16.mxu1 %v864_v0  ;;  %v868_v4 = vld [vmem:[%s1236_s0 + $0x88] sm:$0xff]   ;;  %v870_v6 = vld [vmem:[%s1236_s0 + $0x90] sm:$0xff]  }
   0x3   :  { %v866_v2 = vld [vmem:[%s1236_s0 + $0x80] sm:$0xff]   ;;  %797 = vmatpush3.bf16.msra.mxu0 %v864_v0  ;;  %863 = vmatpush3.bf16.msra.mxu1 %v864_v0  ;;  %v871_v7 = vld [vmem:[%s1236_s0 + $0x18] sm:$0xff]   ;;  %v875_v11 = vld [vmem:[%s1236_s0 + $0x28] sm:$0xff]  }
   0x4   :  { %798 = vmatprep.mubr.msk.bf16.mxu0 %vm244_vm0, %v865_v1  ;;  %830 = vmatprep.mubr.msk.bf16.mxu1 %vm244_vm0, %v866_v2  ;;  %v872_v8 = vld [vmem:[%s1236_s0 + $0x98] sm:$0xff]   ;;  %v873_v9 = vld [vmem:[%s1236_s0 + $0x20] sm:$0xff]   ;;  %v876_v12 = vld [vmem:[%s1236_s0 + $0xa8] sm:$0xff]  }
   0x5   :  { %v874_v10 = vld [vmem:[%s1236_s0 + $0xa0] sm:$0xff]   ;;  %v877_v13 = vld [vmem:[%s1236_s0 + $0x30] sm:$0xff]   ;;  %v879_v15 = vld [vmem:[%s1236_s0 + $0x38] sm:$0xff]  }
   0x6   :  { %799 = vmatmul.mubr.msk.bf16.vlgmr.msra.gmra.mrb[0].mxu0 %vm244_vm0, %v867_v3  ;;  %831 = vmatmul.mubr.msk.bf16.vlgmr.msra.gmra.mrb[0].mxu1 %vm244_vm0, %v868_v4  ;;  %v878_v14 = vld [vmem:[%s1236_s0 + $0xb0] sm:$0xff]   ;;  %v880_v16 = vld [vmem:[%s1236_s0 + $0xb8] sm:$0xff]   ;;  %v881_v17 = vld [vmem:[%s1236_s0 + $0x40] sm:$0xff]  }
   0x7   :  { %802 = vmatprep.mubr.msk.bf16.mxu0 %vm244_vm0, %v869_v5  ;;  %834 = vmatprep.mubr.msk.bf16.mxu1 %vm244_vm0, %v870_v6  ;;  %v882_v18 = vld [vmem:[%s1236_s0 + $0xc0] sm:$0xff]   ;;  %v883_v19 = vld [vmem:[%s1236_s0 + $0x48] sm:$0xff]   ;;  %v885_v21 = vld [vmem:[%s1236_s0 + $0x50] sm:$0xff]  }
   0x8   :  { %v884_v20 = vld [vmem:[%s1236_s0 + $0xc8] sm:$0xff]   ;;  %v886_v22 = vld [vmem:[%s1236_s0 + $0xd0] sm:$0xff]   ;;  %v887_v23 = vld [vmem:[%s1236_s0 + $0x58] sm:$0xff]  }
   0x9   :  { %v888_v24 = vld [vmem:[%s1236_s0 + $0xd8] sm:$0xff]   ;;  %v889_v25 = vld [vmem:[%s1236_s0 + $0x60] sm:$0xff]   ;;  %v891_v27 = vld [vmem:[%s1236_s0 + $0x68] sm:$0xff]  }
   0xa   :  { %v890_v26 = vld [vmem:[%s1236_s0 + $0xe0] sm:$0xff]   ;;  %v892_v28 = vld [vmem:[%s1236_s0 + $0xe8] sm:$0xff]   ;;  %v893_v29 = vld [vmem:[%s1236_s0 + $0x70] sm:$0xff]  }
   0xb   :  { %v894_v30 = vld [vmem:[%s1236_s0 + $0xf0] sm:$0xff]   ;;  %v895_v31 = vld [vmem:[%s1236_s0 + $0x78] sm:$0xff]  }
   0xc   :  { %v896_v32 = vld [vmem:[%s1236_s0 + $0xf8] sm:$0xff]  }
   0xe   :  { %803 = vmatmul.mubr.msk.bf16.gmra.mrb[4].mxu0 %vm244_vm0, %v871_v7  ;;  %835 = vmatmul.mubr.msk.bf16.gmra.mrb[4].mxu1 %vm244_vm0, %v872_v8 }
   0xf   :  { %806 = vmatprep.mubr.msk.bf16.mxu0 %vm244_vm0, %v873_v9  ;;  %838 = vmatprep.mubr.msk.bf16.mxu1 %vm244_vm0, %v874_v10 }
  0x16   :  { %807 = vmatmul.mubr.msk.bf16.gmra.mrb[8].mxu0 %vm244_vm0, %v875_v11  ;;  %839 = vmatmul.mubr.msk.bf16.gmra.mrb[8].mxu1 %vm244_vm0, %v876_v12 }
  0x17   :  { %810 = vmatprep.mubr.msk.bf16.mxu0 %vm244_vm0, %v877_v13  ;;  %842 = vmatprep.mubr.msk.bf16.mxu1 %vm244_vm0, %v878_v14 }
  0x1e   :  { %811 = vmatmul.mubr.msk.bf16.gmra.mrb[12].mxu0 %vm244_vm0, %v879_v15  ;;  %843 = vmatmul.mubr.msk.bf16.gmra.mrb[12].mxu1 %vm244_vm0, %v880_v16 }
  0x1f   :  { %814 = vmatprep.mubr.msk.bf16.mxu0 %vm244_vm0, %v881_v17  ;;  %846 = vmatprep.mubr.msk.bf16.mxu1 %vm244_vm0, %v882_v18 }
  0x26   :  { %815 = vmatmul.mubr.msk.bf16.gmra.mrb[16].mxu0 %vm244_vm0, %v883_v19  ;;  %847 = vmatmul.mubr.msk.bf16.gmra.mrb[16].mxu1 %vm244_vm0, %v884_v20 }
  0x27   :  { %818 = vmatprep.mubr.msk.bf16.mxu0 %vm244_vm0, %v885_v21  ;;  %850 = vmatprep.mubr.msk.bf16.mxu1 %vm244_vm0, %v886_v22 }
  0x2e   :  { %819 = vmatmul.mubr.msk.bf16.gmra.mrb[20].mxu0 %vm244_vm0, %v887_v23  ;;  %851 = vmatmul.mubr.msk.bf16.gmra.mrb[20].mxu1 %vm244_vm0, %v888_v24 }
  0x2f   :  { %822 = vmatprep.mubr.msk.bf16.mxu0 %vm244_vm0, %v889_v25  ;;  %854 = vmatprep.mubr.msk.bf16.mxu1 %vm244_vm0, %v890_v26 }
  0x36   :  { %823 = vmatmul.mubr.msk.bf16.gmra.mrb[24].mxu0 %vm244_vm0, %v891_v27  ;;  %855 = vmatmul.mubr.msk.bf16.gmra.mrb[24].mxu1 %vm244_vm0, %v892_v28 }
  0x37   :  { %826 = vmatprep.mubr.msk.bf16.mxu0 %vm244_vm0, %v893_v29  ;;  %858 = vmatprep.mubr.msk.bf16.mxu1 %vm244_vm0, %v894_v30 }
  0x3e   :  { %827 = vmatmul.mubr.msk.bf16.gmra.mrb[28].mxu0 %vm244_vm0, %v895_v31  ;;  %859 = vmatmul.mubr.msk.bf16.gmra.mrb[28].mxu1 %vm244_vm0, %v896_v32 }
  0xd9   :  { %v800_v33 = vpop.f32.mrb[0].mxu0  ;;  %v832_v34 = vpop.f32.mrb[0].mxu1 }
  0xda   :  { %632 = vst [vmem:[%s1237_s2 + $0x10] sm:$0xff] %v800_v33  ;;  %664 = vst [vmem:[%s1237_s2 + $0x110] sm:$0xff] %v832_v34  ;;  %v375_v35 = vpop.f32.mrb[1].mxu0  ;;  %v503_v36 = vpop.f32.mrb[1].mxu1 }
  0xdb   :  { %630 = vst [vmem:[%s1237_s2] sm:$0xff] %v375_v35  ;;  %662 = vst [vmem:[%s1237_s2 + $0x100] sm:$0xff] %v503_v36  ;;  %v801_v37 = vpop.f32.mrb[2].mxu0  ;;  %v833_v38 = vpop.f32.mrb[2].mxu1 }
  0xdc   :  { %633 = vst [vmem:[%s1237_s2 + $0x18] sm:$0xff] %v801_v37  ;;  %665 = vst [vmem:[%s1237_s2 + $0x118] sm:$0xff] %v833_v38  ;;  %v378_v39 = vpop.f32.mrb[3].mxu0  ;;  %v506_v40 = vpop.f32.mrb[3].mxu1 }
  0xdd   :  { %631 = vst [vmem:[%s1237_s2 + $0x8] sm:$0xff] %v378_v39  ;;  %663 = vst [vmem:[%s1237_s2 + $0x108] sm:$0xff] %v506_v40 }
  0xe1   :  { %v804_v41 = vpop.f32.mrb[4].mxu0  ;;  %v836_v42 = vpop.f32.mrb[4].mxu1 }
  0xe2   :  { %636 = vst [vmem:[%s1237_s2 + $0x30] sm:$0xff] %v804_v41  ;;  %668 = vst [vmem:[%s1237_s2 + $0x130] sm:$0xff] %v836_v42  ;;  %v391_v43 = vpop.f32.mrb[5].mxu0  ;;  %v519_v44 = vpop.f32.mrb[5].mxu1 }
  0xe3   :  { %634 = vst [vmem:[%s1237_s2 + $0x20] sm:$0xff] %v391_v43  ;;  %666 = vst [vmem:[%s1237_s2 + $0x120] sm:$0xff] %v519_v44  ;;  %v805_v45 = vpop.f32.mrb[6].mxu0  ;;  %v837_v46 = vpop.f32.mrb[6].mxu1 }
  0xe4   :  { %637 = vst [vmem:[%s1237_s2 + $0x38] sm:$0xff] %v805_v45  ;;  %669 = vst [vmem:[%s1237_s2 + $0x138] sm:$0xff] %v837_v46  ;;  %v394_v47 = vpop.f32.mrb[7].mxu0  ;;  %v522_v48 = vpop.f32.mrb[7].mxu1 }
  0xe5   :  { %635 = vst [vmem:[%s1237_s2 + $0x28] sm:$0xff] %v394_v47  ;;  %667 = vst [vmem:[%s1237_s2 + $0x128] sm:$0xff] %v522_v48 }
  0xe9   :  { %v808_v49 = vpop.f32.mrb[8].mxu0  ;;  %v840_v50 = vpop.f32.mrb[8].mxu1 }
  0xea   :  { %640 = vst [vmem:[%s1237_s2 + $0x50] sm:$0xff] %v808_v49  ;;  %672 = vst [vmem:[%s1237_s2 + $0x150] sm:$0xff] %v840_v50  ;;  %v407_v51 = vpop.f32.mrb[9].mxu0  ;;  %v535_v52 = vpop.f32.mrb[9].mxu1 }
  0xeb   :  { %638 = vst [vmem:[%s1237_s2 + $0x40] sm:$0xff] %v407_v51  ;;  %670 = vst [vmem:[%s1237_s2 + $0x140] sm:$0xff] %v535_v52  ;;  %v809_v53 = vpop.f32.mrb[10].mxu0  ;;  %v841_v54 = vpop.f32.mrb[10].mxu1 }
  0xec   :  { %641 = vst [vmem:[%s1237_s2 + $0x58] sm:$0xff] %v809_v53  ;;  %673 = vst [vmem:[%s1237_s2 + $0x158] sm:$0xff] %v841_v54  ;;  %v410_v55 = vpop.f32.mrb[11].mxu0  ;;  %v538_v56 = vpop.f32.mrb[11].mxu1 }
  0xed   :  { %639 = vst [vmem:[%s1237_s2 + $0x48] sm:$0xff] %v410_v55  ;;  %671 = vst [vmem:[%s1237_s2 + $0x148] sm:$0xff] %v538_v56 }
  0xf1   :  { %v812_v57 = vpop.f32.mrb[12].mxu0  ;;  %v844_v58 = vpop.f32.mrb[12].mxu1 }
  0xf2   :  { %644 = vst [vmem:[%s1237_s2 + $0x70] sm:$0xff] %v812_v57  ;;  %676 = vst [vmem:[%s1237_s2 + $0x170] sm:$0xff] %v844_v58  ;;  %v423_v59 = vpop.f32.mrb[13].mxu0  ;;  %v551_v60 = vpop.f32.mrb[13].mxu1 }
  0xf3   :  { %642 = vst [vmem:[%s1237_s2 + $0x60] sm:$0xff] %v423_v59  ;;  %674 = vst [vmem:[%s1237_s2 + $0x160] sm:$0xff] %v551_v60  ;;  %v813_v61 = vpop.f32.mrb[14].mxu0  ;;  %v845_v62 = vpop.f32.mrb[14].mxu1 }
  0xf4   :  { %645 = vst [vmem:[%s1237_s2 + $0x78] sm:$0xff] %v813_v61  ;;  %677 = vst [vmem:[%s1237_s2 + $0x178] sm:$0xff] %v845_v62  ;;  %v426_v63 = vpop.f32.mrb[15].mxu0  ;;  %v554_v0 = vpop.f32.mrb[15].mxu1 }
  0xf5   :  { %643 = vst [vmem:[%s1237_s2 + $0x68] sm:$0xff] %v426_v63  ;;  %675 = vst [vmem:[%s1237_s2 + $0x168] sm:$0xff] %v554_v0 }
  0xf9   :  { %v816_v1 = vpop.f32.mrb[16].mxu0  ;;  %v848_v2 = vpop.f32.mrb[16].mxu1 }
  0xfa   :  { %648 = vst [vmem:[%s1237_s2 + $0x90] sm:$0xff] %v816_v1  ;;  %680 = vst [vmem:[%s1237_s2 + $0x190] sm:$0xff] %v848_v2  ;;  %v439_v3 = vpop.f32.mrb[17].mxu0  ;;  %v567_v4 = vpop.f32.mrb[17].mxu1 }
  0xfb   :  { %646 = vst [vmem:[%s1237_s2 + $0x80] sm:$0xff] %v439_v3  ;;  %678 = vst [vmem:[%s1237_s2 + $0x180] sm:$0xff] %v567_v4  ;;  %v817_v5 = vpop.f32.mrb[18].mxu0  ;;  %v849_v6 = vpop.f32.mrb[18].mxu1 }
  0xfc   :  { %649 = vst [vmem:[%s1237_s2 + $0x98] sm:$0xff] %v817_v5  ;;  %681 = vst [vmem:[%s1237_s2 + $0x198] sm:$0xff] %v849_v6  ;;  %v442_v7 = vpop.f32.mrb[19].mxu0  ;;  %v570_v8 = vpop.f32.mrb[19].mxu1 }
  0xfd   :  { %647 = vst [vmem:[%s1237_s2 + $0x88] sm:$0xff] %v442_v7  ;;  %679 = vst [vmem:[%s1237_s2 + $0x188] sm:$0xff] %v570_v8 }
 0x101   :  { %v820_v9 = vpop.f32.mrb[20].mxu0  ;;  %v852_v10 = vpop.f32.mrb[20].mxu1 }
 0x102   :  { %652 = vst [vmem:[%s1237_s2 + $0xb0] sm:$0xff] %v820_v9  ;;  %684 = vst [vmem:[%s1237_s2 + $0x1b0] sm:$0xff] %v852_v10  ;;  %v455_v11 = vpop.f32.mrb[21].mxu0  ;;  %v583_v12 = vpop.f32.mrb[21].mxu1 }
 0x103   :  { %650 = vst [vmem:[%s1237_s2 + $0xa0] sm:$0xff] %v455_v11  ;;  %682 = vst [vmem:[%s1237_s2 + $0x1a0] sm:$0xff] %v583_v12  ;;  %v821_v13 = vpop.f32.mrb[22].mxu0  ;;  %v853_v14 = vpop.f32.mrb[22].mxu1 }
 0x104   :  { %653 = vst [vmem:[%s1237_s2 + $0xb8] sm:$0xff] %v821_v13  ;;  %685 = vst [vmem:[%s1237_s2 + $0x1b8] sm:$0xff] %v853_v14  ;;  %v458_v15 = vpop.f32.mrb[23].mxu0  ;;  %v586_v16 = vpop.f32.mrb[23].mxu1 }
 0x105   :  { %651 = vst [vmem:[%s1237_s2 + $0xa8] sm:$0xff] %v458_v15  ;;  %683 = vst [vmem:[%s1237_s2 + $0x1a8] sm:$0xff] %v586_v16 }
 0x109   :  { %v824_v17 = vpop.f32.mrb[24].mxu0  ;;  %v856_v18 = vpop.f32.mrb[24].mxu1 }
 0x10a   :  { %656 = vst [vmem:[%s1237_s2 + $0xd0] sm:$0xff] %v824_v17  ;;  %688 = vst [vmem:[%s1237_s2 + $0x1d0] sm:$0xff] %v856_v18  ;;  %v471_v19 = vpop.f32.mrb[25].mxu0  ;;  %v599_v20 = vpop.f32.mrb[25].mxu1 }
 0x10b   :  { %654 = vst [vmem:[%s1237_s2 + $0xc0] sm:$0xff] %v471_v19  ;;  %686 = vst [vmem:[%s1237_s2 + $0x1c0] sm:$0xff] %v599_v20  ;;  %v825_v21 = vpop.f32.mrb[26].mxu0  ;;  %v857_v22 = vpop.f32.mrb[26].mxu1 }
 0x10c   :  { %657 = vst [vmem:[%s1237_s2 + $0xd8] sm:$0xff] %v825_v21  ;;  %689 = vst [vmem:[%s1237_s2 + $0x1d8] sm:$0xff] %v857_v22  ;;  %v474_v23 = vpop.f32.mrb[27].mxu0  ;;  %v602_v24 = vpop.f32.mrb[27].mxu1 }
 0x10d   :  { %655 = vst [vmem:[%s1237_s2 + $0xc8] sm:$0xff] %v474_v23  ;;  %687 = vst [vmem:[%s1237_s2 + $0x1c8] sm:$0xff] %v602_v24 }
 0x111   :  { %v828_v25 = vpop.f32.mrb[28].mxu0  ;;  %v860_v26 = vpop.f32.mrb[28].mxu1 }
 0x112   :  { %660 = vst [vmem:[%s1237_s2 + $0xf0] sm:$0xff] %v828_v25  ;;  %692 = vst [vmem:[%s1237_s2 + $0x1f0] sm:$0xff] %v860_v26  ;;  %v487_v27 = vpop.f32.mrb[29].mxu0  ;;  %v615_v28 = vpop.f32.mrb[29].mxu1 }
 0x113   :  { %658 = vst [vmem:[%s1237_s2 + $0xe0] sm:$0xff] %v487_v27  ;;  %690 = vst [vmem:[%s1237_s2 + $0x1e0] sm:$0xff] %v615_v28  ;;  %v829_v29 = vpop.f32.mrb[30].mxu0  ;;  %v861_v30 = vpop.f32.mrb[30].mxu1 }
 0x114   :  { %661 = vst [vmem:[%s1237_s2 + $0xf8] sm:$0xff] %v829_v29  ;;  %693 = vst [vmem:[%s1237_s2 + $0x1f8] sm:$0xff] %v861_v30  ;;  %v490_v31 = vpop.f32.mrb[31].mxu0  ;;  %v618_v32 = vpop.f32.mrb[31].mxu1 }
 0x115   :  { %659 = vst [vmem:[%s1237_s2 + $0xe8] sm:$0xff] %v490_v31  ;;  %691 = vst [vmem:[%s1237_s2 + $0x1e8] sm:$0xff] %v618_v32 }

// kernel: generator_forward.9
= control target key start
LH: loop header
LB: loop body
LE: loop exit
PB: predicated region body
PF: predicated region fallthrough
CT: control target
= control target key end

     0   :  { %s1956_s9 = smov 0   ;;  %s2240_s0 = inlined_call_operand.vmem [shape: bf16[2048,8], index: 0, kind: input, shape index: {}]   ;;  %s2241_s1 = inlined_call_operand.vmem [shape: bf16[8,128], index: 1, kind: input, shape index: {}]   ;;  %s2242_s2 = inlined_call_operand.vmem [shape: f32[2048,128], index: 2, kind: output, shape index: {}]  }
   0x1 LB: > { %s1523_s10 = sadd.s32 4294967295, %s1939_s9   ;;  %p1527_p0 = scmp.ge.s32.totalorder %s1939_s9, 1  ;;  %s1939_s9 = sphi %s1956_s9, %s12_s9  }
   0x2   : > { %p113_p1 = scmp.lt.s32.totalorder %s1939_s9, 3 }
   0x4   : > { %p114_p2 = pnand %p1527_p0, %p113_p1 }
   0x5   : > { %v276_v0 = vld [vmem:[%s2241_s1] sm:$0xf] (!%p114_p2)  ;;  %vm790_vm0 = vcmask (!%p114_p2), 1043456   ;;  %s1528_s13 = sshll.u32 (!%p114_p2), %s1523_s10, 7  ;;  %vm597_vm1 = vcmask (!%p114_p2), 64512  }
   0x6   : > { %117 = sbr.rel (%p114_p2) target bundleno = 355 (0x163), region = 28  ;;  %1859 = vmatprep.subr.msk.bf16.mxu0 (!%p114_p2), %vm790_vm0, %v276_v0  ;;  %1860 = vmatprep.subr.msk.bf16.mxu1 (!%p114_p2), %vm790_vm0, %v276_v0  ;;  %v792_v1 = vsel (!%p114_p2), %vm790_vm0, %v276_v0, 0  ;;  %p136_p3 = scmp.lt.s32.totalorder (!%p114_p2), %s1528_s13, 255 }
   0x7   : > { %1728 = vmatpush3.bf16.msra.mxu0 (!%p114_p2), %v792_v1  ;;  %1858 = vmatpush3.bf16.msra.mxu1 (!%p114_p2), %v792_v1 }
   0xd   : > { %s2244_s13 = smov (!%p136_p3, %s1528_s13), 255 }
   0xe   : > { %s1529_s14 = sshll.u32 %s2244_s13, 2  ;;  %s1531_s18 = sshll.u32 %s2244_s13, 3 }
   0xf   : > { %s1973_s17 = scalar_lea.vmem %s2240_s0, %s1529_s14  ;;  %s2107_s21 = scalar_lea.vmem %s2242_s2, %s1531_s18 }
  0x10   : > { %v1869_v2 = vld [vmem:[%s1973_s17] sm:$0xff]   ;;  %v1871_v4 = vld [vmem:[%s1973_s17 + $0x8] sm:$0xff]   ;;  %v1873_v6 = vld [vmem:[%s1973_s17 + $0x10] sm:$0xff]  }
  0x11   : > { %v1870_v3 = vld [vmem:[%s1973_s17 + $0x100] sm:$0xff]   ;;  %1729 = vmatprep.mubr.msk.bf16.mxu0 %vm597_vm1, %v1869_v2  ;;  %v1872_v5 = vld [vmem:[%s1973_s17 + $0x108] sm:$0xff]   ;;  %v1874_v7 = vld [vmem:[%s1973_s17 + $0x110] sm:$0xff]  }
  0x12   : > { %1793 = vmatprep.mubr.msk.bf16.mxu1 %vm597_vm1, %v1870_v3  ;;  %1730 = vmatmul.mubr.msk.bf16.vlgmr.msra.gmra.mrb[0].mxu0 %vm597_vm1, %v1871_v4  ;;  %v1875_v8 = vld [vmem:[%s1973_s17 + $0x18] sm:$0xff]   ;;  %v1877_v10 = vld [vmem:[%s1973_s17 + $0x20] sm:$0xff]   ;;  %v1879_v12 = vld [vmem:[%s1973_s17 + $0x28] sm:$0xff]  }
  0x13   : > { %1794 = vmatmul.mubr.msk.bf16.vlgmr.msra.gmra.mrb[0].mxu1 %vm597_vm1, %v1872_v5  ;;  %1733 = vmatprep.mubr.msk.bf16.mxu0 %vm597_vm1, %v1873_v6  ;;  %v1876_v9 = vld [vmem:[%s1973_s17 + $0x118] sm:$0xff]   ;;  %v1878_v11 = vld [vmem:[%s1973_s17 + $0x120] sm:$0xff]   ;;  %v1880_v13 = vld [vmem:[%s1973_s17 + $0x128] sm:$0xff]  }
  0x14   : > { %1797 = vmatprep.mubr.msk.bf16.mxu1 %vm597_vm1, %v1874_v7  ;;  %v1881_v14 = vld [vmem:[%s1973_s17 + $0x30] sm:$0xff]   ;;  %v1883_v16 = vld [vmem:[%s1973_s17 + $0x38] sm:$0xff]   ;;  %v1885_v18 = vld [vmem:[%s1973_s17 + $0x40] sm:$0xff]  }
  0x15   : > { %v1882_v15 = vld [vmem:[%s1973_s17 + $0x130] sm:$0xff]   ;;  %v1884_v17 = vld [vmem:[%s1973_s17 + $0x138] sm:$0xff]   ;;  %v1886_v19 = vld [vmem:[%s1973_s17 + $0x140] sm:$0xff]  }
  0x16   : > { %v1887_v20 = vld [vmem:[%s1973_s17 + $0x48] sm:$0xff]   ;;  %v1889_v22 = vld [vmem:[%s1973_s17 + $0x50] sm:$0xff]   ;;  %v1891_v24 = vld [vmem:[%s1973_s17 + $0x58] sm:$0xff]  }
  0x17   : > { %v1888_v21 = vld [vmem:[%s1973_s17 + $0x148] sm:$0xff]   ;;  %v1890_v23 = vld [vmem:[%s1973_s17 + $0x150] sm:$0xff]   ;;  %v1892_v25 = vld [vmem:[%s1973_s17 + $0x158] sm:$0xff]  }
  0x18   : > { %v1893_v26 = vld [vmem:[%s1973_s17 + $0x60] sm:$0xff]   ;;  %v1895_v28 = vld [vmem:[%s1973_s17 + $0x68] sm:$0xff]   ;;  %v1897_v30 = vld [vmem:[%s1973_s17 + $0x70] sm:$0xff]  }
  0x19   : > { %v1894_v27 = vld [vmem:[%s1973_s17 + $0x160] sm:$0xff]   ;;  %v1896_v29 = vld [vmem:[%s1973_s17 + $0x168] sm:$0xff]   ;;  %v1898_v31 = vld [vmem:[%s1973_s17 + $0x170] sm:$0xff]  }
  0x1a   : > { %1734 = vmatmul.mubr.msk.bf16.gmra.mrb[4].mxu0 %vm597_vm1, %v1875_v8  ;;  %v1899_v32 = vld [vmem:[%s1973_s17 + $0x78] sm:$0xff]   ;;  %v1901_v34 = vld [vmem:[%s1973_s17 + $0x80] sm:$0xff]   ;;  %v1903_v36 = vld [vmem:[%s1973_s17 + $0x88] sm:$0xff]  }
  0x1b   : > { %1798 = vmatmul.mubr.msk.bf16.gmra.mrb[4].mxu1 %vm597_vm1, %v1876_v9  ;;  %1737 = vmatprep.mubr.msk.bf16.mxu0 %vm597_vm1, %v1877_v10  ;;  %v1900_v33 = vld [vmem:[%s1973_s17 + $0x178] sm:$0xff]   ;;  %v1902_v35 = vld [vmem:[%s1973_s17 + $0x180] sm:$0xff]   ;;  %v1904_v37 = vld [vmem:[%s1973_s17 + $0x188] sm:$0xff]  }
  0x1c   : > { %1801 = vmatprep.mubr.msk.bf16.mxu1 %vm597_vm1, %v1878_v11  ;;  %v1905_v38 = vld [vmem:[%s1973_s17 + $0x90] sm:$0xff]   ;;  %v1907_v40 = vld [vmem:[%s1973_s17 + $0x98] sm:$0xff]   ;;  %v1909_v42 = vld [vmem:[%s1973_s17 + $0xa0] sm:$0xff]  }
  0x1d   : > { %v1906_v39 = vld [vmem:[%s1973_s17 + $0x190] sm:$0xff]   ;;  %v1908_v41 = vld [vmem:[%s1973_s17 + $0x198] sm:$0xff]   ;;  %v1910_v43 = vld [vmem:[%s1973_s17 + $0x1a0] sm:$0xff]  }
  0x1e   : > { %v1911_v44 = vld [vmem:[%s1973_s17 + $0xa8] sm:$0xff]   ;;  %v1913_v46 = vld [vmem:[%s1973_s17 + $0xb0] sm:$0xff]   ;;  %v1915_v48 = vld [vmem:[%s1973_s17 + $0xb8] sm:$0xff]  }
  0x1f   : > { %v1912_v45 = vld [vmem:[%s1973_s17 + $0x1a8] sm:$0xff]   ;;  %v1914_v47 = vld [vmem:[%s1973_s17 + $0x1b0] sm:$0xff]   ;;  %v1916_v49 = vld [vmem:[%s1973_s17 + $0x1b8] sm:$0xff]  }
  0x20   : > { %v1917_v50 = vld [vmem:[%s1973_s17 + $0xc0] sm:$0xff]   ;;  %v1919_v52 = vld [vmem:[%s1973_s17 + $0xc8] sm:$0xff]   ;;  %v1921_v54 = vld [vmem:[%s1973_s17 + $0xd0] sm:$0xff]  }
  0x21   : > { %v1918_v51 = vld [vmem:[%s1973_s17 + $0x1c0] sm:$0xff]   ;;  %v1920_v53 = vld [vmem:[%s1973_s17 + $0x1c8] sm:$0xff]   ;;  %v1922_v55 = vld [vmem:[%s1973_s17 + $0x1d0] sm:$0xff]  }
  0x22   : > { %1738 = vmatmul.mubr.msk.bf16.gmra.mrb[8].mxu0 %vm597_vm1, %v1879_v12  ;;  %v1923_v56 = vld [vmem:[%s1973_s17 + $0xd8] sm:$0xff]   ;;  %v1925_v58 = vld [vmem:[%s1973_s17 + $0xe0] sm:$0xff]   ;;  %v1927_v60 = vld [vmem:[%s1973_s17 + $0xe8] sm:$0xff]  }
  0x23   : > { %1802 = vmatmul.mubr.msk.bf16.gmra.mrb[8].mxu1 %vm597_vm1, %v1880_v13  ;;  %1741 = vmatprep.mubr.msk.bf16.mxu0 %vm597_vm1, %v1881_v14  ;;  %v1924_v57 = vld [vmem:[%s1973_s17 + $0x1d8] sm:$0xff]   ;;  %v1926_v59 = vld [vmem:[%s1973_s17 + $0x1e0] sm:$0xff]   ;;  %v1928_v61 = vld [vmem:[%s1973_s17 + $0x1e8] sm:$0xff]  }
  0x24   : > { %1805 = vmatprep.mubr.msk.bf16.mxu1 %vm597_vm1, %v1882_v15  ;;  %v1929_v62 = vld [vmem:[%s1973_s17 + $0xf0] sm:$0xff]   ;;  %v1931_v0 = vld [vmem:[%s1973_s17 + $0xf8] sm:$0xff]  }
  0x25   : > { %v1930_v63 = vld [vmem:[%s1973_s17 + $0x1f0] sm:$0xff]   ;;  %v1932_v1 = vld [vmem:[%s1973_s17 + $0x1f8] sm:$0xff]  }
  0x2a   : > { %1742 = vmatmul.mubr.msk.bf16.gmra.mrb[12].mxu0 %vm597_vm1, %v1883_v16 }
  0x2b   : > { %1806 = vmatmul.mubr.msk.bf16.gmra.mrb[12].mxu1 %vm597_vm1, %v1884_v17  ;;  %1745 = vmatprep.mubr.msk.bf16.mxu0 %vm597_vm1, %v1885_v18 }
  0x2c   : > { %1809 = vmatprep.mubr.msk.bf16.mxu1 %vm597_vm1, %v1886_v19 }
  0x32   : > { %1746 = vmatmul.mubr.msk.bf16.gmra.mrb[16].mxu0 %vm597_vm1, %v1887_v20 }
  0x33   : > { %1810 = vmatmul.mubr.msk.bf16.gmra.mrb[16].mxu1 %vm597_vm1, %v1888_v21  ;;  %1749 = vmatprep.mubr.msk.bf16.mxu0 %vm597_vm1, %v1889_v22 }
  0x34   : > { %1813 = vmatprep.mubr.msk.bf16.mxu1 %vm597_vm1, %v1890_v23 }
  0x3a   : > { %1750 = vmatmul.mubr.msk.bf16.gmra.mrb[20].mxu0 %vm597_vm1, %v1891_v24 }
  0x3b   : > { %1814 = vmatmul.mubr.msk.bf16.gmra.mrb[20].mxu1 %vm597_vm1, %v1892_v25  ;;  %1753 = vmatprep.mubr.msk.bf16.mxu0 %vm597_vm1, %v1893_v26 }
  0x3c   : > { %1817 = vmatprep.mubr.msk.bf16.mxu1 %vm597_vm1, %v1894_v27 }
  0x42   : > { %1754 = vmatmul.mubr.msk.bf16.gmra.mrb[24].mxu0 %vm597_vm1, %v1895_v28 }
  0x43   : > { %1818 = vmatmul.mubr.msk.bf16.gmra.mrb[24].mxu1 %vm597_vm1, %v1896_v29  ;;  %1757 = vmatprep.mubr.msk.bf16.mxu0 %vm597_vm1, %v1897_v30 }
  0x44   : > { %1821 = vmatprep.mubr.msk.bf16.mxu1 %vm597_vm1, %v1898_v31 }
  0x4a   : > { %1758 = vmatmul.mubr.msk.bf16.gmra.mrb[28].mxu0 %vm597_vm1, %v1899_v32 }
  0x4b   : > { %1822 = vmatmul.mubr.msk.bf16.gmra.mrb[28].mxu1 %vm597_vm1, %v1900_v33  ;;  %1761 = vmatprep.mubr.msk.bf16.mxu0 %vm597_vm1, %v1901_v34 }
  0x4c   : > { %1825 = vmatprep.mubr.msk.bf16.mxu1 %vm597_vm1, %v1902_v35 }
  0x52   : > { %1762 = vmatmul.mubr.msk.bf16.gmra.mrb[32].mxu0 %vm597_vm1, %v1903_v36 }
  0x53   : > { %1826 = vmatmul.mubr.msk.bf16.gmra.mrb[32].mxu1 %vm597_vm1, %v1904_v37  ;;  %1765 = vmatprep.mubr.msk.bf16.mxu0 %vm597_vm1, %v1905_v38 }
  0x54   : > { %1829 = vmatprep.mubr.msk.bf16.mxu1 %vm597_vm1, %v1906_v39 }
  0x5a   : > { %1766 = vmatmul.mubr.msk.bf16.gmra.mrb[36].mxu0 %vm597_vm1, %v1907_v40 }
  0x5b   : > { %1830 = vmatmul.mubr.msk.bf16.gmra.mrb[36].mxu1 %vm597_vm1, %v1908_v41  ;;  %1769 = vmatprep.mubr.msk.bf16.mxu0 %vm597_vm1, %v1909_v42 }
  0x5c   : > { %1833 = vmatprep.mubr.msk.bf16.mxu1 %vm597_vm1, %v1910_v43 }
  0x62   : > { %1770 = vmatmul.mubr.msk.bf16.gmra.mrb[40].mxu0 %vm597_vm1, %v1911_v44 }
  0x63   : > { %1834 = vmatmul.mubr.msk.bf16.gmra.mrb[40].mxu1 %vm597_vm1, %v1912_v45  ;;  %1773 = vmatprep.mubr.msk.bf16.mxu0 %vm597_vm1, %v1913_v46 }
  0x64   : > { %1837 = vmatprep.mubr.msk.bf16.mxu1 %vm597_vm1, %v1914_v47 }
  0x6a   : > { %1774 = vmatmul.mubr.msk.bf16.gmra.mrb[44].mxu0 %vm597_vm1, %v1915_v48 }
  0x6b   : > { %1838 = vmatmul.mubr.msk.bf16.gmra.mrb[44].mxu1 %vm597_vm1, %v1916_v49  ;;  %1777 = vmatprep.mubr.msk.bf16.mxu0 %vm597_vm1, %v1917_v50 }
  0x6c   : > { %1841 = vmatprep.mubr.msk.bf16.mxu1 %vm597_vm1, %v1918_v51 }
  0x72   : > { %1778 = vmatmul.mubr.msk.bf16.gmra.mrb[48].mxu0 %vm597_vm1, %v1919_v52 }
  0x73   : > { %1842 = vmatmul.mubr.msk.bf16.gmra.mrb[48].mxu1 %vm597_vm1, %v1920_v53  ;;  %1781 = vmatprep.mubr.msk.bf16.mxu0 %vm597_vm1, %v1921_v54 }
  0x74   : > { %1845 = vmatprep.mubr.msk.bf16.mxu1 %vm597_vm1, %v1922_v55 }
  0x7a   : > { %1782 = vmatmul.mubr.msk.bf16.gmra.mrb[52].mxu0 %vm597_vm1, %v1923_v56 }
  0x7b   : > { %1846 = vmatmul.mubr.msk.bf16.gmra.mrb[52].mxu1 %vm597_vm1, %v1924_v57  ;;  %1785 = vmatprep.mubr.msk.bf16.mxu0 %vm597_vm1, %v1925_v58 }
  0x7c   : > { %1849 = vmatprep.mubr.msk.bf16.mxu1 %vm597_vm1, %v1926_v59 }
  0x82   : > { %1786 = vmatmul.mubr.msk.bf16.gmra.mrb[56].mxu0 %vm597_vm1, %v1927_v60 }
  0x83   : > { %1850 = vmatmul.mubr.msk.bf16.gmra.mrb[56].mxu1 %vm597_vm1, %v1928_v61  ;;  %1789 = vmatprep.mubr.msk.bf16.mxu0 %vm597_vm1, %v1929_v62 }
  0x84   : > { %1853 = vmatprep.mubr.msk.bf16.mxu1 %vm597_vm1, %v1930_v63 }
  0x8a   : > { %1790 = vmatmul.mubr.msk.bf16.gmra.mrb[60].mxu0 %vm597_vm1, %v1931_v0 }
  0x8b   : > { %1854 = vmatmul.mubr.msk.bf16.gmra.mrb[60].mxu1 %vm597_vm1, %v1932_v1 }
  0xe5   : > { %v1731_v2 = vpop.f32.mrb[0].mxu0 }
  0xe6   : > { %1341 = vst [vmem:[%s2107_s21 + $0x10] sm:$0xff] %v1731_v2  ;;  %v1795_v3 = vpop.f32.mrb[0].mxu1  ;;  %v828_v4 = vpop.f32.mrb[1].mxu0 }
  0xe7   : > { %1405 = vst [vmem:[%s2107_s21 + $0x210] sm:$0xff] %v1795_v3  ;;  %1339 = vst [vmem:[%s2107_s21] sm:$0xff] %v828_v4  ;;  %v1084_v5 = vpop.f32.mrb[1].mxu1  ;;  %v1732_v6 = vpop.f32.mrb[2].mxu0 }
  0xe8   : > { %1403 = vst [vmem:[%s2107_s21 + $0x200] sm:$0xff] %v1084_v5  ;;  %1342 = vst [vmem:[%s2107_s21 + $0x18] sm:$0xff] %v1732_v6  ;;  %v1796_v7 = vpop.f32.mrb[2].mxu1  ;;  %v831_v8 = vpop.f32.mrb[3].mxu0 }
  0xe9   : > { %1406 = vst [vmem:[%s2107_s21 + $0x218] sm:$0xff] %v1796_v7  ;;  %1340 = vst [vmem:[%s2107_s21 + $0x8] sm:$0xff] %v831_v8  ;;  %v1087_v9 = vpop.f32.mrb[3].mxu1 }
  0xea   : > { %1404 = vst [vmem:[%s2107_s21 + $0x208] sm:$0xff] %v1087_v9 }
  0xed   : > { %v1735_v10 = vpop.f32.mrb[4].mxu0 }
  0xee   : > { %1345 = vst [vmem:[%s2107_s21 + $0x30] sm:$0xff] %v1735_v10  ;;  %v1799_v11 = vpop.f32.mrb[4].mxu1  ;;  %v844_v12 = vpop.f32.mrb[5].mxu0 }
  0xef   : > { %1409 = vst [vmem:[%s2107_s21 + $0x230] sm:$0xff] %v1799_v11  ;;  %1343 = vst [vmem:[%s2107_s21 + $0x20] sm:$0xff] %v844_v12  ;;  %v1100_v13 = vpop.f32.mrb[5].mxu1  ;;  %v1736_v14 = vpop.f32.mrb[6].mxu0 }
  0xf0   : > { %1407 = vst [vmem:[%s2107_s21 + $0x220] sm:$0xff] %v1100_v13  ;;  %1346 = vst [vmem:[%s2107_s21 + $0x38] sm:$0xff] %v1736_v14  ;;  %v1800_v15 = vpop.f32.mrb[6].mxu1  ;;  %v847_v16 = vpop.f32.mrb[7].mxu0 }
  0xf1   : > { %1410 = vst [vmem:[%s2107_s21 + $0x238] sm:$0xff] %v1800_v15  ;;  %1344 = vst [vmem:[%s2107_s21 + $0x28] sm:$0xff] %v847_v16  ;;  %v1103_v17 = vpop.f32.mrb[7].mxu1 }
  0xf2   : > { %1408 = vst [vmem:[%s2107_s21 + $0x228] sm:$0xff] %v1103_v17 }
  0xf5   : > { %v1739_v18 = vpop.f32.mrb[8].mxu0 }
  0xf6   : > { %1349 = vst [vmem:[%s2107_s21 + $0x50] sm:$0xff] %v1739_v18  ;;  %v1803_v19 = vpop.f32.mrb[8].mxu1  ;;  %v860_v20 = vpop.f32.mrb[9].mxu0 }
  0xf7   : > { %1413 = vst [vmem:[%s2107_s21 + $0x250] sm:$0xff] %v1803_v19  ;;  %1347 = vst [vmem:[%s2107_s21 + $0x40] sm:$0xff] %v860_v20  ;;  %v1116_v21 = vpop.f32.mrb[9].mxu1  ;;  %v1740_v22 = vpop.f32.mrb[10].mxu0 }
  0xf8   : > { %1411 = vst [vmem:[%s2107_s21 + $0x240] sm:$0xff] %v1116_v21  ;;  %1350 = vst [vmem:[%s2107_s21 + $0x58] sm:$0xff] %v1740_v22  ;;  %v1804_v23 = vpop.f32.mrb[10].mxu1  ;;  %v863_v24 = vpop.f32.mrb[11].mxu0 }
  0xf9   : > { %1414 = vst [vmem:[%s2107_s21 + $0x258] sm:$0xff] %v1804_v23  ;;  %1348 = vst [vmem:[%s2107_s21 + $0x48] sm:$0xff] %v863_v24  ;;  %v1119_v25 = vpop.f32.mrb[11].mxu1 }
  0xfa   : > { %1412 = vst [vmem:[%s2107_s21 + $0x248] sm:$0xff] %v1119_v25 }
  0xfd   : > { %v1743_v26 = vpop.f32.mrb[12].mxu0 }
  0xfe   : > { %1353 = vst [vmem:[%s2107_s21 + $0x70] sm:$0xff] %v1743_v26  ;;  %v1807_v27 = vpop.f32.mrb[12].mxu1  ;;  %v876_v28 = vpop.f32.mrb[13].mxu0 }
  0xff   : > { %1417 = vst [vmem:[%s2107_s21 + $0x270] sm:$0xff] %v1807_v27  ;;  %1351 = vst [vmem:[%s2107_s21 + $0x60] sm:$0xff] %v876_v28  ;;  %v1132_v29 = vpop.f32.mrb[13].mxu1  ;;  %v1744_v30 = vpop.f32.mrb[14].mxu0 }
 0x100   : > { %1415 = vst [vmem:[%s2107_s21 + $0x260] sm:$0xff] %v1132_v29  ;;  %1354 = vst [vmem:[%s2107_s21 + $0x78] sm:$0xff] %v1744_v30  ;;  %v1808_v31 = vpop.f32.mrb[14].mxu1  ;;  %v879_v32 = vpop.f32.mrb[15].mxu0 }
 0x101   : > { %1418 = vst [vmem:[%s2107_s21 + $0x278] sm:$0xff] %v1808_v31  ;;  %1352 = vst [vmem:[%s2107_s21 + $0x68] sm:$0xff] %v879_v32  ;;  %v1135_v33 = vpop.f32.mrb[15].mxu1 }
 0x102   : > { %1416 = vst [vmem:[%s2107_s21 + $0x268] sm:$0xff] %v1135_v33 }
 0x105   : > { %v1747_v34 = vpop.f32.mrb[16].mxu0 }
 0x106   : > { %1357 = vst [vmem:[%s2107_s21 + $0x90] sm:$0xff] %v1747_v34  ;;  %v1811_v35 = vpop.f32.mrb[16].mxu1  ;;  %v892_v36 = vpop.f32.mrb[17].mxu0 }
 0x107   : > { %1421 = vst [vmem:[%s2107_s21 + $0x290] sm:$0xff] %v1811_v35  ;;  %1355 = vst [vmem:[%s2107_s21 + $0x80] sm:$0xff] %v892_v36  ;;  %v1148_v37 = vpop.f32.mrb[17].mxu1  ;;  %v1748_v38 = vpop.f32.mrb[18].mxu0 }
 0x108   : > { %1419 = vst [vmem:[%s2107_s21 + $0x280] sm:$0xff] %v1148_v37  ;;  %1358 = vst [vmem:[%s2107_s21 + $0x98] sm:$0xff] %v1748_v38  ;;  %v1812_v39 = vpop.f32.mrb[18].mxu1  ;;  %v895_v40 = vpop.f32.mrb[19].mxu0 }
 0x109   : > { %1422 = vst [vmem:[%s2107_s21 + $0x298] sm:$0xff] %v1812_v39  ;;  %1356 = vst [vmem:[%s2107_s21 + $0x88] sm:$0xff] %v895_v40  ;;  %v1151_v41 = vpop.f32.mrb[19].mxu1 }
 0x10a   : > { %1420 = vst [vmem:[%s2107_s21 + $0x288] sm:$0xff] %v1151_v41 }
 0x10d   : > { %v1751_v42 = vpop.f32.mrb[20].mxu0 }
 0x10e   : > { %1361 = vst [vmem:[%s2107_s21 + $0xb0] sm:$0xff] %v1751_v42  ;;  %v1815_v43 = vpop.f32.mrb[20].mxu1  ;;  %v908_v44 = vpop.f32.mrb[21].mxu0 }
 0x10f   : > { %1425 = vst [vmem:[%s2107_s21 + $0x2b0] sm:$0xff] %v1815_v43  ;;  %1359 = vst [vmem:[%s2107_s21 + $0xa0] sm:$0xff] %v908_v44  ;;  %v1164_v45 = vpop.f32.mrb[21].mxu1  ;;  %v1752_v46 = vpop.f32.mrb[22].mxu0 }
 0x110   : > { %1423 = vst [vmem:[%s2107_s21 + $0x2a0] sm:$0xff] %v1164_v45  ;;  %1362 = vst [vmem:[%s2107_s21 + $0xb8] sm:$0xff] %v1752_v46  ;;  %v1816_v47 = vpop.f32.mrb[22].mxu1  ;;  %v911_v48 = vpop.f32.mrb[23].mxu0 }
 0x111   : > { %1426 = vst [vmem:[%s2107_s21 + $0x2b8] sm:$0xff] %v1816_v47  ;;  %1360 = vst [vmem:[%s2107_s21 + $0xa8] sm:$0xff] %v911_v48  ;;  %v1167_v49 = vpop.f32.mrb[23].mxu1 }
 0x112   : > { %1424 = vst [vmem:[%s2107_s21 + $0x2a8] sm:$0xff] %v1167_v49 }
 0x115   : > { %v1755_v50 = vpop.f32.mrb[24].mxu0 }
 0x116   : > { %1365 = vst [vmem:[%s2107_s21 + $0xd0] sm:$0xff] %v1755_v50  ;;  %v1819_v51 = vpop.f32.mrb[24].mxu1  ;;  %v924_v52 = vpop.f32.mrb[25].mxu0 }
 0x117   : > { %1429 = vst [vmem:[%s2107_s21 + $0x2d0] sm:$0xff] %v1819_v51  ;;  %1363 = vst [vmem:[%s2107_s21 + $0xc0] sm:$0xff] %v924_v52  ;;  %v1180_v53 = vpop.f32.mrb[25].mxu1  ;;  %v1756_v54 = vpop.f32.mrb[26].mxu0 }
 0x118   : > { %1427 = vst [vmem:[%s2107_s21 + $0x2c0] sm:$0xff] %v1180_v53  ;;  %1366 = vst [vmem:[%s2107_s21 + $0xd8] sm:$0xff] %v1756_v54  ;;  %v1820_v55 = vpop.f32.mrb[26].mxu1  ;;  %v927_v56 = vpop.f32.mrb[27].mxu0 }
 0x119   : > { %1430 = vst [vmem:[%s2107_s21 + $0x2d8] sm:$0xff] %v1820_v55  ;;  %1364 = vst [vmem:[%s2107_s21 + $0xc8] sm:$0xff] %v927_v56  ;;  %v1183_v57 = vpop.f32.mrb[27].mxu1 }
 0x11a   : > { %1428 = vst [vmem:[%s2107_s21 + $0x2c8] sm:$0xff] %v1183_v57 }
 0x11d   : > { %v1759_v58 = vpop.f32.mrb[28].mxu0 }
 0x11e   : > { %1369 = vst [vmem:[%s2107_s21 + $0xf0] sm:$0xff] %v1759_v58  ;;  %v1823_v59 = vpop.f32.mrb[28].mxu1  ;;  %v940_v60 = vpop.f32.mrb[29].mxu0 }
 0x11f   : > { %1433 = vst [vmem:[%s2107_s21 + $0x2f0] sm:$0xff] %v1823_v59  ;;  %1367 = vst [vmem:[%s2107_s21 + $0xe0] sm:$0xff] %v940_v60  ;;  %v1196_v61 = vpop.f32.mrb[29].mxu1  ;;  %v1760_v62 = vpop.f32.mrb[30].mxu0 }
 0x120   : > { %1431 = vst [vmem:[%s2107_s21 + $0x2e0] sm:$0xff] %v1196_v61  ;;  %1370 = vst [vmem:[%s2107_s21 + $0xf8] sm:$0xff] %v1760_v62  ;;  %v1824_v63 = vpop.f32.mrb[30].mxu1  ;;  %v943_v0 = vpop.f32.mrb[31].mxu0 }
 0x121   : > { %1434 = vst [vmem:[%s2107_s21 + $0x2f8] sm:$0xff] %v1824_v63  ;;  %1368 = vst [vmem:[%s2107_s21 + $0xe8] sm:$0xff] %v943_v0  ;;  %v1199_v1 = vpop.f32.mrb[31].mxu1 }
 0x122   : > { %1432 = vst [vmem:[%s2107_s21 + $0x2e8] sm:$0xff] %v1199_v1 }
 0x125   : > { %v1763_v2 = vpop.f32.mrb[32].mxu0 }
 0x126   : > { %1373 = vst [vmem:[%s2107_s21 + $0x110] sm:$0xff] %v1763_v2  ;;  %v1827_v3 = vpop.f32.mrb[32].mxu1  ;;  %v956_v4 = vpop.f32.mrb[33].mxu0 }
 0x127   : > { %1437 = vst [vmem:[%s2107_s21 + $0x310] sm:$0xff] %v1827_v3  ;;  %1371 = vst [vmem:[%s2107_s21 + $0x100] sm:$0xff] %v956_v4  ;;  %v1212_v5 = vpop.f32.mrb[33].mxu1  ;;  %v1764_v6 = vpop.f32.mrb[34].mxu0 }
 0x128   : > { %1435 = vst [vmem:[%s2107_s21 + $0x300] sm:$0xff] %v1212_v5  ;;  %1374 = vst [vmem:[%s2107_s21 + $0x118] sm:$0xff] %v1764_v6  ;;  %v1828_v7 = vpop.f32.mrb[34].mxu1  ;;  %v959_v8 = vpop.f32.mrb[35].mxu0 }
 0x129   : > { %1438 = vst [vmem:[%s2107_s21 + $0x318] sm:$0xff] %v1828_v7  ;;  %1372 = vst [vmem:[%s2107_s21 + $0x108] sm:$0xff] %v959_v8  ;;  %v1215_v9 = vpop.f32.mrb[35].mxu1 }
 0x12a   : > { %1436 = vst [vmem:[%s2107_s21 + $0x308] sm:$0xff] %v1215_v9 }
 0x12d   : > { %v1767_v10 = vpop.f32.mrb[36].mxu0 }
 0x12e   : > { %1377 = vst [vmem:[%s2107_s21 + $0x130] sm:$0xff] %v1767_v10  ;;  %v1831_v11 = vpop.f32.mrb[36].mxu1  ;;  %v972_v12 = vpop.f32.mrb[37].mxu0 }
 0x12f   : > { %1441 = vst [vmem:[%s2107_s21 + $0x330] sm:$0xff] %v1831_v11  ;;  %1375 = vst [vmem:[%s2107_s21 + $0x120] sm:$0xff] %v972_v12  ;;  %v1228_v13 = vpop.f32.mrb[37].mxu1  ;;  %v1768_v14 = vpop.f32.mrb[38].mxu0 }
 0x130   : > { %1439 = vst [vmem:[%s2107_s21 + $0x320] sm:$0xff] %v1228_v13  ;;  %1378 = vst [vmem:[%s2107_s21 + $0x138] sm:$0xff] %v1768_v14  ;;  %v1832_v15 = vpop.f32.mrb[38].mxu1  ;;  %v975_v16 = vpop.f32.mrb[39].mxu0 }
 0x131   : > { %1442 = vst [vmem:[%s2107_s21 + $0x338] sm:$0xff] %v1832_v15  ;;  %1376 = vst [vmem:[%s2107_s21 + $0x128] sm:$0xff] %v975_v16  ;;  %v1231_v17 = vpop.f32.mrb[39].mxu1 }
 0x132   : > { %1440 = vst [vmem:[%s2107_s21 + $0x328] sm:$0xff] %v1231_v17 }
 0x135   : > { %v1771_v18 = vpop.f32.mrb[40].mxu0 }
 0x136   : > { %1381 = vst [vmem:[%s2107_s21 + $0x150] sm:$0xff] %v1771_v18  ;;  %v1835_v19 = vpop.f32.mrb[40].mxu1  ;;  %v988_v20 = vpop.f32.mrb[41].mxu0 }
 0x137   : > { %1445 = vst [vmem:[%s2107_s21 + $0x350] sm:$0xff] %v1835_v19  ;;  %1379 = vst [vmem:[%s2107_s21 + $0x140] sm:$0xff] %v988_v20  ;;  %v1244_v21 = vpop.f32.mrb[41].mxu1  ;;  %v1772_v22 = vpop.f32.mrb[42].mxu0 }
 0x138   : > { %1443 = vst [vmem:[%s2107_s21 + $0x340] sm:$0xff] %v1244_v21  ;;  %1382 = vst [vmem:[%s2107_s21 + $0x158] sm:$0xff] %v1772_v22  ;;  %v1836_v23 = vpop.f32.mrb[42].mxu1  ;;  %v991_v24 = vpop.f32.mrb[43].mxu0 }
 0x139   : > { %1446 = vst [vmem:[%s2107_s21 + $0x358] sm:$0xff] %v1836_v23  ;;  %1380 = vst [vmem:[%s2107_s21 + $0x148] sm:$0xff] %v991_v24  ;;  %v1247_v25 = vpop.f32.mrb[43].mxu1 }
 0x13a   : > { %1444 = vst [vmem:[%s2107_s21 + $0x348] sm:$0xff] %v1247_v25 }
 0x13d   : > { %v1775_v26 = vpop.f32.mrb[44].mxu0 }
 0x13e   : > { %1385 = vst [vmem:[%s2107_s21 + $0x170] sm:$0xff] %v1775_v26  ;;  %v1839_v27 = vpop.f32.mrb[44].mxu1  ;;  %v1004_v28 = vpop.f32.mrb[45].mxu0 }
 0x13f   : > { %1449 = vst [vmem:[%s2107_s21 + $0x370] sm:$0xff] %v1839_v27  ;;  %1383 = vst [vmem:[%s2107_s21 + $0x160] sm:$0xff] %v1004_v28  ;;  %v1260_v29 = vpop.f32.mrb[45].mxu1  ;;  %v1776_v30 = vpop.f32.mrb[46].mxu0 }
 0x140   : > { %1447 = vst [vmem:[%s2107_s21 + $0x360] sm:$0xff] %v1260_v29  ;;  %1386 = vst [vmem:[%s2107_s21 + $0x178] sm:$0xff] %v1776_v30  ;;  %v1840_v31 = vpop.f32.mrb[46].mxu1  ;;  %v1007_v32 = vpop.f32.mrb[47].mxu0 }
 0x141   : > { %1450 = vst [vmem:[%s2107_s21 + $0x378] sm:$0xff] %v1840_v31  ;;  %1384 = vst [vmem:[%s2107_s21 + $0x168] sm:$0xff] %v1007_v32  ;;  %v1263_v33 = vpop.f32.mrb[47].mxu1 }
 0x142   : > { %1448 = vst [vmem:[%s2107_s21 + $0x368] sm:$0xff] %v1263_v33 }
 0x145   : > { %v1779_v34 = vpop.f32.mrb[48].mxu0 }
 0x146   : > { %1389 = vst [vmem:[%s2107_s21 + $0x190] sm:$0xff] %v1779_v34  ;;  %v1843_v35 = vpop.f32.mrb[48].mxu1  ;;  %v1020_v36 = vpop.f32.mrb[49].mxu0 }
 0x147   : > { %1453 = vst [vmem:[%s2107_s21 + $0x390] sm:$0xff] %v1843_v35  ;;  %1387 = vst [vmem:[%s2107_s21 + $0x180] sm:$0xff] %v1020_v36  ;;  %v1276_v37 = vpop.f32.mrb[49].mxu1  ;;  %v1780_v38 = vpop.f32.mrb[50].mxu0 }
 0x148   : > { %1451 = vst [vmem:[%s2107_s21 + $0x380] sm:$0xff] %v1276_v37  ;;  %1390 = vst [vmem:[%s2107_s21 + $0x198] sm:$0xff] %v1780_v38  ;;  %v1844_v39 = vpop.f32.mrb[50].mxu1  ;;  %v1023_v40 = vpop.f32.mrb[51].mxu0 }
 0x149   : > { %1454 = vst [vmem:[%s2107_s21 + $0x398] sm:$0xff] %v1844_v39  ;;  %1388 = vst [vmem:[%s2107_s21 + $0x188] sm:$0xff] %v1023_v40  ;;  %v1279_v41 = vpop.f32.mrb[51].mxu1 }
 0x14a   : > { %1452 = vst [vmem:[%s2107_s21 + $0x388] sm:$0xff] %v1279_v41 }
 0x14d   : > { %v1783_v42 = vpop.f32.mrb[52].mxu0 }
 0x14e   : > { %1393 = vst [vmem:[%s2107_s21 + $0x1b0] sm:$0xff] %v1783_v42  ;;  %v1847_v43 = vpop.f32.mrb[52].mxu1  ;;  %v1036_v44 = vpop.f32.mrb[53].mxu0 }
 0x14f   : > { %1457 = vst [vmem:[%s2107_s21 + $0x3b0] sm:$0xff] %v1847_v43  ;;  %1391 = vst [vmem:[%s2107_s21 + $0x1a0] sm:$0xff] %v1036_v44  ;;  %v1292_v45 = vpop.f32.mrb[53].mxu1  ;;  %v1784_v46 = vpop.f32.mrb[54].mxu0 }
 0x150   : > { %1455 = vst [vmem:[%s2107_s21 + $0x3a0] sm:$0xff] %v1292_v45  ;;  %1394 = vst [vmem:[%s2107_s21 + $0x1b8] sm:$0xff] %v1784_v46  ;;  %v1848_v47 = vpop.f32.mrb[54].mxu1  ;;  %v1039_v48 = vpop.f32.mrb[55].mxu0 }
 0x151   : > { %1458 = vst [vmem:[%s2107_s21 + $0x3b8] sm:$0xff] %v1848_v47  ;;  %1392 = vst [vmem:[%s2107_s21 + $0x1a8] sm:$0xff] %v1039_v48  ;;  %v1295_v49 = vpop.f32.mrb[55].mxu1 }
 0x152   : > { %1456 = vst [vmem:[%s2107_s21 + $0x3a8] sm:$0xff] %v1295_v49 }
 0x155   : > { %v1787_v50 = vpop.f32.mrb[56].mxu0 }
 0x156   : > { %1397 = vst [vmem:[%s2107_s21 + $0x1d0] sm:$0xff] %v1787_v50  ;;  %v1851_v51 = vpop.f32.mrb[56].mxu1  ;;  %v1052_v52 = vpop.f32.mrb[57].mxu0 }
 0x157   : > { %1461 = vst [vmem:[%s2107_s21 + $0x3d0] sm:$0xff] %v1851_v51  ;;  %1395 = vst [vmem:[%s2107_s21 + $0x1c0] sm:$0xff] %v1052_v52  ;;  %v1308_v53 = vpop.f32.mrb[57].mxu1  ;;  %v1788_v54 = vpop.f32.mrb[58].mxu0 }
 0x158   : > { %1459 = vst [vmem:[%s2107_s21 + $0x3c0] sm:$0xff] %v1308_v53  ;;  %1398 = vst [vmem:[%s2107_s21 + $0x1d8] sm:$0xff] %v1788_v54  ;;  %v1852_v55 = vpop.f32.mrb[58].mxu1  ;;  %v1055_v56 = vpop.f32.mrb[59].mxu0 }
 0x159   : > { %1462 = vst [vmem:[%s2107_s21 + $0x3d8] sm:$0xff] %v1852_v55  ;;  %1396 = vst [vmem:[%s2107_s21 + $0x1c8] sm:$0xff] %v1055_v56  ;;  %v1311_v57 = vpop.f32.mrb[59].mxu1 }
 0x15a   : > { %1460 = vst [vmem:[%s2107_s21 + $0x3c8] sm:$0xff] %v1311_v57 }
 0x15d   : > { %v1791_v58 = vpop.f32.mrb[60].mxu0 }
 0x15e   : > { %1401 = vst [vmem:[%s2107_s21 + $0x1f0] sm:$0xff] %v1791_v58  ;;  %v1855_v59 = vpop.f32.mrb[60].mxu1  ;;  %v1068_v60 = vpop.f32.mrb[61].mxu0 }
 0x15f   : > { %1465 = vst [vmem:[%s2107_s21 + $0x3f0] sm:$0xff] %v1855_v59  ;;  %1399 = vst [vmem:[%s2107_s21 + $0x1e0] sm:$0xff] %v1068_v60  ;;  %v1324_v61 = vpop.f32.mrb[61].mxu1  ;;  %v1792_v62 = vpop.f32.mrb[62].mxu0 }
 0x160   : > { %1463 = vst [vmem:[%s2107_s21 + $0x3e0] sm:$0xff] %v1324_v61  ;;  %1402 = vst [vmem:[%s2107_s21 + $0x1f8] sm:$0xff] %v1792_v62  ;;  %v1856_v63 = vpop.f32.mrb[62].mxu1  ;;  %v1071_v0 = vpop.f32.mrb[63].mxu0 }
 0x161   : > { %1466 = vst [vmem:[%s2107_s21 + $0x3f8] sm:$0xff] %v1856_v63  ;;  %1400 = vst [vmem:[%s2107_s21 + $0x1e8] sm:$0xff] %v1071_v0  ;;  %v1327_v1 = vpop.f32.mrb[63].mxu1 }
 0x162   : > { %1464 = vst [vmem:[%s2107_s21 + $0x3e8] sm:$0xff] %v1327_v1 }
 0x163 PF: > { %s12_s9 = sadd.s32 1, %s1939_s9  }
 0x164   : > { %p9_p4 = scmp.ge.s32.totalorder %s12_s9, 4  }
 0x166   :  { %11 = sbr.rel (!%p9_p4) target bundleno = 1 (0x1), region = 58 }

</bundles_post_ra>
